<compile_context>
chip_gen: v7x
topology: tpu7x:2x2x1
jax: 0.10.0
libtpu: 0.0.40
codegen_flags: <defaults>
</compile_context>

<pallas_src>
import functools
import math

import jax
import jax.numpy as jnp
import numpy as np
from jax.experimental import pallas as pl
from jax.experimental.pallas import tpu as pltpu


# ---------------------------------------------------------------------------
# Fused Pallas kernel
# ---------------------------------------------------------------------------
def _fused_subsample_kernel(xe_ref, xo_ref, a1_ref, b1t_ref, w2_ref, b2_ref,
                            wl_ref, bl_ref, pe_ref, o_ref, h1e_scr, h1o_scr,
                            *, tt2, f2, odim, xscale):
    """conv1 + ReLU + conv2 + ReLU + Linear + pos-enc for one (batch, T2-tile).

    xe_ref : (R4, 3*idim)      bf16  input rows [4r+0 | 4r+1 | 4r+2] on lanes
    xo_ref : (R4, 3*idim)      bf16  input rows [4r+2 | 4r+3 | 4r+4] on lanes
    a1_ref : (3*idim, F1*odim) bf16  conv1 freq-Toeplitz, rows in (kh, i) order
    b1t_ref: (1, F1*odim)      f32   conv1 bias tiled per frequency
    w2_ref : (9*odim, odim)    bf16  conv2 weight, rows in (kh, kw, c_in) order
    b2_ref : (1, odim)         f32
    wl_ref : (F2, odim, odim)  bf16  Linear weight, one (c_in, c_out) slab per f
    bl_ref : (1, odim)         f32
    pe_ref : (TT2, odim)       f32   sinusoidal PE rows for this tile
    o_ref  : (TT2, odim)       f32
    h1e_scr: (TT2+1, F1*odim)  bf16  conv1 rows with even t1 (t1 = 2*(base+u))
    h1o_scr: (TT2,   F1*odim)  bf16  conv1 rows with odd  t1
    """
    j = pl.program_id(1)
    r0 = pl.multiple_of(j * tt2, tt2)        # first packed input row of the tile

    a1 = a1_ref[...]
    b1t = b1t_ref[...]

    # ---- conv1 (3x3, stride 2, C_in=1): one matmul per time parity -----------
    # even t1 = 2*(j*tt2 + u), u = 0..tt2  (row tt2 only feeds conv2's kh=2 tap)
    xe = xe_ref[pl.ds(r0, tt2 + 1), :]
    acc_e = jnp.dot(xe, a1, preferred_element_type=jnp.float32)
    h1e_scr[...] = jnp.maximum(acc_e + b1t, 0.0).astype(jnp.bfloat16)
    # odd t1 = 2*(j*tt2 + u) + 1, u = 0..tt2-1 -- computed after the even store
    # so only one f32 (tt2+1, F1*odim) accumulator is live at a time.
    xo = xo_ref[pl.ds(r0, tt2), :]
    acc_o = jnp.dot(xo, a1, preferred_element_type=jnp.float32)
    h1o_scr[...] = jnp.maximum(acc_o + b1t, 0.0).astype(jnp.bfloat16)

    # ---- conv2 (3x3, stride 2) + ReLU + Linear, per output frequency ---------
    # For output frequency fo the 3x3 patch covers input frequencies
    # 2fo .. 2fo+2, which are CONTIGUOUS lanes of the scratch, so all 9 taps
    # fuse into one K = 9*odim matmul; the Linear is an accumulating K = odim
    # matmul.  No strided reads, no reshapes, no relayouts.
    b2 = b2_ref[...]
    y = jnp.zeros((tt2, odim), jnp.float32)
    for fo in range(f2):
        lo = 2 * fo * odim
        hi = lo + 3 * odim
        patch = jnp.concatenate(
            [h1e_scr[0:tt2, lo:hi],            # kh = 0 : t1 = 2*t2
             h1o_scr[0:tt2, lo:hi],            # kh = 1 : t1 = 2*t2 + 1
             h1e_scr[1:tt2 + 1, lo:hi]],       # kh = 2 : t1 = 2*t2 + 2
            axis=-1)                           # (tt2, 9*odim), cols (kh, kw, c)
        h2 = jnp.maximum(
            jnp.dot(patch, w2_ref[...], preferred_element_type=jnp.float32)
            + b2, 0.0)
        y = y + jnp.dot(h2.astype(jnp.bfloat16), wl_ref[fo],
                        preferred_element_type=jnp.float32)

    # ---- Linear bias, scale and positional encoding --------------------------
    y = (y + bl_ref[...]) * xscale + pe_ref[...]
    # TODO(synk): PositionalEncoding dropout is skipped (eval-mode identity).
    o_ref[...] = y.astype(o_ref.dtype)


# ---------------------------------------------------------------------------
# Wrapper: parameter reshuffling + pallas_call
# ---------------------------------------------------------------------------
def _sinusoidal_pe(length, d_model, dtype=jnp.float32):
    position = jnp.arange(length, dtype=jnp.float32)[:, None]
    div_term = jnp.exp(jnp.arange(0, d_model, 2, dtype=jnp.float32)
                       * -(math.log(10000.0) / d_model))
    pe = jnp.zeros((length, d_model), dtype=jnp.float32)
    pe = pe.at[:, 0::2].set(jnp.sin(position * div_term))
    pe = pe.at[:, 1::2].set(jnp.cos(position * div_term))
    return pe.astype(dtype)


def _vmem_limit_bytes():
    # ~3/4 of physical VMEM, capped at 96 MiB (v5e/v6e: 128 MiB physical,
    # v7x: 64 MiB per TensorCore -> 48 MiB).  Conservative fallback if the
    # query is unavailable (e.g. interpret mode / older runtimes).
    try:
        cap = int(pltpu.get_tpu_info().vmem_capacity_bytes)
        return max(min(cap * 3 // 4, 96 * 1024 * 1024), 32 * 1024 * 1024)
    except Exception:
        return 48 * 1024 * 1024


def conv2d_subsampling(x, x_mask, params, odim, *, tile_t2=16):
    """Pallas implementation of Conv2dSubsampling.forward (eval mode).

    x      : (B, T, idim) float32
    x_mask : (B, 1, T) bool or None
    returns (y, mask) with y: (B, T2, odim)
    """
    w1, b1, w2, b2, wlin, blin = (params["w1"], params["b1"], params["w2"],
                                  params["b2"], params["wlin"], params["blin"])
    bsz, t, idim = x.shape
    f1 = (idim - 1) // 2
    f2 = (f1 - 1) // 2
    t1 = (t - 1) // 2
    t2 = (t1 - 1) // 2
    assert f2 >= 1 and t2 >= 1, "input too small for two stride-2 3x3 convs"

    # Time tiling: TT2 output frames per grid step (multiple of 8 when tiled).
    if t2 <= tile_t2:
        tt2 = t2
    else:
        tt2 = max(8, (tile_t2 // 8) * 8)
    nt = (t2 + tt2 - 1) // tt2
    t2p = nt * tt2

    # ---- de-interleave the input by time mod 4 (contiguous in-kernel loads) --
    # Packed row r carries input rows 4r .. 4r+4 (one-row halo), so both conv1
    # parities are plain contiguous slices inside the kernel:
    #   xe[b, r, kh*idim:(kh+1)*idim] = x[b, 4r + kh]        (even t1 rows)
    #   xo[b, r, kh*idim:(kh+1)*idim] = x[b, 4r + 2 + kh]    (odd  t1 rows)
    r4 = t2p + 1
    t_need = 4 * (r4 + 1)                    # always >= t for valid t2
    xb = x.astype(jnp.bfloat16)
    xb = jnp.pad(xb, ((0, 0), (0, t_need - t), (0, 0)))
    x4 = xb.reshape(bsz, r4 + 1, 4, idim)
    xe_in = x4[:, :r4, 0:3, :].reshape(bsz, r4, 3 * idim)
    xo_in = jnp.concatenate(
        [x4[:, :r4, 2:4, :], x4[:, 1:r4 + 1, 0:1, :]],
        axis=2).reshape(bsz, r4, 3 * idim)

    # ---- operands: bf16 matmul inputs, f32 biases / PE ------------------------
    # conv1 weight (odim, 1, 3, 3) -> stacked frequency-Toeplitz (3*idim, F1*odim)
    #   a1[kh*idim + i, f*odim + c] = w1[c, 0, kh, i - 2f]   for 0 <= i - 2f < 3
    w1k = jnp.transpose(w1[:, 0], (1, 2, 0))                      # (kh, kw, c)
    kw_rel = jnp.arange(idim)[:, None] - 2 * jnp.arange(f1)[None, :]
    valid = (kw_rel >= 0) & (kw_rel < 3)
    a1 = jnp.where(valid[None, :, :, None],
                   w1k[:, jnp.clip(kw_rel, 0, 2), :], 0.0)        # (3, idim, F1, odim)
    a1 = a1.reshape(3 * idim, f1 * odim).astype(jnp.bfloat16)
    b1t = jnp.tile(b1, f1).reshape(1, f1 * odim)

    # conv2 weight (odim, odim, 3, 3) -> (9*odim, odim), rows in (kh, kw, c_in)
    w2r = jnp.transpose(w2, (2, 3, 1, 0)).reshape(9 * odim, odim)
    w2r = w2r.astype(jnp.bfloat16)
    b2r = b2.reshape(1, odim)

    # Linear weight (odim, odim*F2): torch feature order is (c_in, f).
    # Split per input frequency: wl[f, c_in, c_out] = wlin[c_out, c_in*F2 + f].
    wl = jnp.transpose(wlin.reshape(odim, odim, f2), (2, 1, 0)).astype(jnp.bfloat16)
    blr = blin.reshape(1, odim)

    pe = _sinusoidal_pe(t2p, odim)
    xscale = float(math.sqrt(odim))

    kern = functools.partial(_fused_subsample_kernel, tt2=tt2, f2=f2,
                             odim=odim, xscale=xscale)
    y = pl.pallas_call(
        kern,
        out_shape=jax.ShapeDtypeStruct((bsz, t2p, odim), jnp.float32),
        grid_spec=pltpu.PrefetchScalarGridSpec(
            num_scalar_prefetch=0,
            grid=(bsz, nt),
            in_specs=[
                # packed utterance, resident across the T2 tiles of one batch row
                pl.BlockSpec((None, r4, 3 * idim), lambda i, j: (i, 0, 0)),
                pl.BlockSpec((None, r4, 3 * idim), lambda i, j: (i, 0, 0)),
                # weights / biases: constant index maps -> loaded once, resident
                pl.BlockSpec((3 * idim, f1 * odim), lambda i, j: (0, 0)),
                pl.BlockSpec((1, f1 * odim), lambda i, j: (0, 0)),
                pl.BlockSpec((9 * odim, odim), lambda i, j: (0, 0)),
                pl.BlockSpec((1, odim), lambda i, j: (0, 0)),
                pl.BlockSpec((f2, odim, odim), lambda i, j: (0, 0, 0)),
                pl.BlockSpec((1, odim), lambda i, j: (0, 0)),
                # PE rows tile along with the output
                pl.BlockSpec((tt2, odim), lambda i, j: (j, 0)),
            ],
            out_specs=pl.BlockSpec((None, tt2, odim), lambda i, j: (i, j, 0)),
            scratch_shapes=[
                pltpu.VMEM((tt2 + 1, f1 * odim), jnp.bfloat16),
                pltpu.VMEM((tt2, f1 * odim), jnp.bfloat16),
            ],
        ),
        compiler_params=pltpu.CompilerParams(
            # both grid axes are independent -> megacore can split either
            dimension_semantics=("parallel", "parallel"),
            vmem_limit_bytes=_vmem_limit_bytes(),
        ),
    )(xe_in, xo_in, a1, b1t, w2r, b2r, wl, blr, pe)

    y = y[:, :t2, :]                             # drop padded time frames
    if x_mask is None:
        return y, None
    return y, x_mask[:, :, :-2:2][:, :, :-2:2]


# ---------------------------------------------------------------------------
# Plain-JAX reference (mirrors the PyTorch module) and synthetic params
# ---------------------------------------------------------------------------
def _im2col_3x3_s2(x):
    """x: (B, H, W, C) -> (B, Ho*Wo, 9*C) with patch order (kh, kw, c)."""
    b, h, w, c = x.shape
    ho = (h - 3) // 2 + 1
    wo = (w - 3) // 2 + 1
    cols = []
    for kh in range(3):
        for kw in range(3):
            cols.append(x[:, kh:kh + 2 * ho:2, kw:kw + 2 * wo:2, :])
    p = jnp.stack(cols, axis=3)                  # (B, Ho, Wo, 9, C)
    return p.reshape(b, ho * wo, 9 * c), ho, wo


def _reference(x, params, odim):
    w1, b1, w2, b2, wlin, blin = (params["w1"], params["b1"], params["w2"],
                                  params["b2"], params["wlin"], params["blin"])
    bsz, t, idim = x.shape
    p1, t1, f1 = _im2col_3x3_s2(x[:, :, :, None])
    w1r = jnp.transpose(w1, (2, 3, 1, 0)).reshape(9, odim)
    h1 = jnp.maximum(p1 @ w1r + b1, 0.0).reshape(bsz, t1, f1, odim)
    p2, t2, f2 = _im2col_3x3_s2(h1)
    w2r = jnp.transpose(w2, (2, 3, 1, 0)).reshape(9 * odim, odim)
    h2 = jnp.maximum(p2 @ w2r + b2, 0.0).reshape(bsz, t2, f2, odim)
    feat = jnp.transpose(h2, (0, 1, 3, 2)).reshape(bsz, t2, odim * f2)  # (c, f)
    y = feat @ wlin.T + blin
    return y * math.sqrt(odim) + _sinusoidal_pe(t2, odim)[None]


def init_params(key, idim, odim):
    """Deterministic synthetic parameters matching the module's shapes."""
    f2 = ((idim - 1) // 2 - 1) // 2
    ks = jax.random.split(key, 6)
    s1 = 1.0 / math.sqrt(1 * 3 * 3)
    s2 = 1.0 / math.sqrt(odim * 3 * 3)
    s3 = 1.0 / math.sqrt(odim * f2)
    return {
        "w1": jax.random.uniform(ks[0], (odim, 1, 3, 3), jnp.float32, -s1, s1),
        "b1": jax.random.uniform(ks[1], (odim,), jnp.float32, -s1, s1),
        "w2": jax.random.uniform(ks[2], (odim, odim, 3, 3), jnp.float32, -s2, s2),
        "b2": jax.random.uniform(ks[3], (odim,), jnp.float32, -s2, s2),
        "wlin": jax.random.uniform(ks[4], (odim, odim * f2), jnp.float32, -s3, s3),
        "blin": jax.random.uniform(ks[5], (odim,), jnp.float32, -s3, s3),
    }


if __name__ == "__main__":
    # odim=128 keeps the output stores lane-dense; T=200 -> T2=49 exercises the
    # multi-tile path (tiles of tt2=16, last tile mostly padding + sliced off).
    B, T, IDIM, ODIM = 2, 200, 16, 128

    key = jax.random.PRNGKey(0)
    k_x, k_p = jax.random.split(key)
    x = jax.random.normal(k_x, (B, T, IDIM), dtype=jnp.float32)
    x_mask = jnp.ones((B, 1, T), dtype=bool)
    params = init_params(k_p, IDIM, ODIM)

    y, mask = conv2d_subsampling(x, x_mask, params, ODIM, tile_t2=16)
    y = jax.block_until_ready(y)
    mask = jax.block_until_ready(mask)

    t2 = ((T - 1) // 2 - 1) // 2
    assert y.shape == (B, t2, ODIM), y.shape
    assert mask.shape == (B, 1, t2), mask.shape

    # Correctness vs plain-JAX f32 reference (tolerance reflects bf16 operands
    # with f32 accumulation through two convs + a Linear).
    y_ref = jax.block_until_ready(_reference(x, params, ODIM))
    np.testing.assert_allclose(np.asarray(y), np.asarray(y_ref),
                               rtol=1e-1, atol=2e-1)
    print("KERNEL_OK")
</pallas_src>

<mosaic_0001>
module attributes {stable_mosaic.version = 11 : i64} {
  func.func @_fused_subsample_kernel(%arg0: i32, %arg1: i32, %arg2: memref<1x65x48xbf16, #tpu.memory_space<vmem>>, %arg3: memref<1x65x48xbf16, #tpu.memory_space<vmem>>, %arg4: memref<48x896xbf16, #tpu.memory_space<vmem>>, %arg5: memref<1x896xf32, #tpu.memory_space<vmem>>, %arg6: memref<1152x128xbf16, #tpu.memory_space<vmem>>, %arg7: memref<1x128xf32, #tpu.memory_space<vmem>>, %arg8: memref<3x128x128xbf16, #tpu.memory_space<vmem>>, %arg9: memref<1x128xf32, #tpu.memory_space<vmem>>, %arg10: memref<16x128xf32, #tpu.memory_space<vmem>>, %arg11: memref<1x16x128xf32, #tpu.memory_space<vmem>>, %arg12: memref<17x896xbf16, #tpu.memory_space<vmem>>, %arg13: memref<16x896xbf16, #tpu.memory_space<vmem>>) attributes {dimension_semantics = [#tpu.dimension_semantics<parallel>, #tpu.dimension_semantics<parallel>], iteration_bounds = array<i64: 2, 4>, scalar_prefetch = 0 : i64, scratch_operands = 2 : i64, tpu.core_type = #tpu.core_type<tc>, window_params = [{transform_indices = @transform_0, window_bounds = array<i64: 1, 65, 48>}, {transform_indices = @transform_1, window_bounds = array<i64: 1, 65, 48>}, {pipeline_mode = #tpu.pipeline_mode<synchronous>, transform_indices = @transform_2, window_bounds = array<i64: 48, 896>}, {pipeline_mode = #tpu.pipeline_mode<synchronous>, transform_indices = @transform_3, window_bounds = array<i64: 1, 896>}, {pipeline_mode = #tpu.pipeline_mode<synchronous>, transform_indices = @transform_4, window_bounds = array<i64: 1152, 128>}, {pipeline_mode = #tpu.pipeline_mode<synchronous>, transform_indices = @transform_5, window_bounds = array<i64: 1, 128>}, {pipeline_mode = #tpu.pipeline_mode<synchronous>, transform_indices = @transform_6, window_bounds = array<i64: 3, 128, 128>}, {pipeline_mode = #tpu.pipeline_mode<synchronous>, transform_indices = @transform_7, window_bounds = array<i64: 1, 128>}, {transform_indices = @transform_8, window_bounds = array<i64: 16, 128>}, {transform_indices = @transform_9, window_bounds = array<i64: 1, 16, 128>}]} {
    %c16_i32 = arith.constant 16 : i32
    %0 = arith.muli %arg1, %c16_i32 : i32
    %1 = tpu.assume_multiple %0, 16 : i32
    %c0 = arith.constant 0 : index
    %c0_0 = arith.constant 0 : index
    %2 = vector.load %arg4[%c0, %c0_0] : memref<48x896xbf16, #tpu.memory_space<vmem>>, vector<48x896xbf16>
    %c0_1 = arith.constant 0 : index
    %c0_2 = arith.constant 0 : index
    %3 = vector.load %arg5[%c0_1, %c0_2] : memref<1x896xf32, #tpu.memory_space<vmem>>, vector<1x896xf32>
    %c0_3 = arith.constant 0 : index
    %4 = arith.index_cast %1 : i32 to index
    %c0_4 = arith.constant 0 : index
    %5 = vector.load %arg2[%c0_3, %4, %c0_4] : memref<1x65x48xbf16, #tpu.memory_space<vmem>>, vector<1x17x48xbf16>
    %6 = vector.shape_cast %5 : vector<1x17x48xbf16> to vector<17x48xbf16>
    %cst = arith.constant dense<0.000000e+00> : vector<17x896xf32>
    %7 = tpu.matmul %6, %2, %cst {dimension_numbers = #tpu.dot_dimension_numbers<[1], [0], [0], [1], [0, 0, 1, 1], [], []>} : vector<17x48xbf16>, vector<48x896xbf16>, vector<17x896xf32> -> vector<17x896xf32>
    %8 = vector.broadcast %3 : vector<1x896xf32> to vector<17x896xf32>
    %9 = arith.addf %7, %8 : vector<17x896xf32>
    %cst_5 = arith.constant 0.000000e+00 : f32
    %10 = vector.broadcast %cst_5 : f32 to vector<17x896xf32>
    %11 = arith.maximumf %9, %10 : vector<17x896xf32>
    %12 = arith.truncf %11 : vector<17x896xf32> to vector<17x896xbf16>
    %c0_6 = arith.constant 0 : index
    %c0_7 = arith.constant 0 : index
    %13 = vector.load %arg12[%c0_6, %c0_7] : memref<17x896xbf16, #tpu.memory_space<vmem>>, vector<17x896xbf16>
    tpu.vector_store %arg12[%c0_6, %c0_7], %12 {strides = array<i32>} : memref<17x896xbf16, #tpu.memory_space<vmem>>, vector<17x896xbf16>,
    %c0_8 = arith.constant 0 : index
    %14 = arith.index_cast %1 : i32 to index
    %c0_9 = arith.constant 0 : index
    %15 = vector.load %arg3[%c0_8, %14, %c0_9] : memref<1x65x48xbf16, #tpu.memory_space<vmem>>, vector<1x16x48xbf16>
    %16 = vector.shape_cast %15 : vector<1x16x48xbf16> to vector<16x48xbf16>
    %cst_10 = arith.constant dense<0.000000e+00> : vector<16x896xf32>
    %17 = tpu.matmul %16, %2, %cst_10 {dimension_numbers = #tpu.dot_dimension_numbers<[1], [0], [0], [1], [0, 0, 1, 1], [], []>} : vector<16x48xbf16>, vector<48x896xbf16>, vector<16x896xf32> -> vector<16x896xf32>
    %18 = vector.broadcast %3 : vector<1x896xf32> to vector<16x896xf32>
    %19 = arith.addf %17, %18 : vector<16x896xf32>
    %cst_11 = arith.constant 0.000000e+00 : f32
    %20 = vector.broadcast %cst_11 : f32 to vector<16x896xf32>
    %21 = arith.maximumf %19, %20 : vector<16x896xf32>
    %22 = arith.truncf %21 : vector<16x896xf32> to vector<16x896xbf16>
    %c0_12 = arith.constant 0 : index
    %c0_13 = arith.constant 0 : index
    %23 = vector.load %arg13[%c0_12, %c0_13] : memref<16x896xbf16, #tpu.memory_space<vmem>>, vector<16x896xbf16>
    tpu.vector_store %arg13[%c0_12, %c0_13], %22 {strides = array<i32>} : memref<16x896xbf16, #tpu.memory_space<vmem>>, vector<16x896xbf16>,
    %c0_14 = arith.constant 0 : index
    %c0_15 = arith.constant 0 : index
    %24 = vector.load %arg7[%c0_14, %c0_15] : memref<1x128xf32, #tpu.memory_space<vmem>>, vector<1x128xf32>
    %cst_16 = arith.constant 0.000000e+00 : f32
    %25 = vector.broadcast %cst_16 : f32 to vector<16x128xf32>
    %c0_17 = arith.constant 0 : index
    %c0_18 = arith.constant 0 : index
    %26 = vector.load %arg12[%c0_17, %c0_18] : memref<17x896xbf16, #tpu.memory_space<vmem>>, vector<16x384xbf16>
    %c0_19 = arith.constant 0 : index
    %c0_20 = arith.constant 0 : index
    %27 = vector.load %arg13[%c0_19, %c0_20] : memref<16x896xbf16, #tpu.memory_space<vmem>>, vector<16x384xbf16>
    %c1 = arith.constant 1 : index
    %c0_21 = arith.constant 0 : index
    %28 = vector.load %arg12[%c1, %c0_21] : memref<17x896xbf16, #tpu.memory_space<vmem>>, vector<16x384xbf16>
    %29 = tpu.concatenate %26, %27, %28 in 1 : vector<16x384xbf16>, vector<16x384xbf16>, vector<16x384xbf16> -> vector<16x1152xbf16>
    %c0_22 = arith.constant 0 : index
    %c0_23 = arith.constant 0 : index
    %30 = vector.load %arg6[%c0_22, %c0_23] : memref<1152x128xbf16, #tpu.memory_space<vmem>>, vector<1152x128xbf16>
    %cst_24 = arith.constant dense<0.000000e+00> : vector<16x128xf32>
    %31 = tpu.matmul %29, %30, %cst_24 {dimension_numbers = #tpu.dot_dimension_numbers<[1], [0], [0], [1], [0, 0, 1, 1], [], []>} : vector<16x1152xbf16>, vector<1152x128xbf16>, vector<16x128xf32> -> vector<16x128xf32>
    %32 = vector.broadcast %24 : vector<1x128xf32> to vector<16x128xf32>
    %33 = arith.addf %31, %32 : vector<16x128xf32>
    %cst_25 = arith.constant 0.000000e+00 : f32
    %34 = vector.broadcast %cst_25 : f32 to vector<16x128xf32>
    %35 = arith.maximumf %33, %34 : vector<16x128xf32>
    %36 = arith.truncf %35 : vector<16x128xf32> to vector<16x128xbf16>
    %c0_26 = arith.constant 0 : index
    %c0_27 = arith.constant 0 : index
    %c0_28 = arith.constant 0 : index
    %37 = vector.load %arg8[%c0_26, %c0_27, %c0_28] : memref<3x128x128xbf16, #tpu.memory_space<vmem>>, vector<1x128x128xbf16>
    %38 = vector.shape_cast %37 : vector<1x128x128xbf16> to vector<128x128xbf16>
    %cst_29 = arith.constant dense<0.000000e+00> : vector<16x128xf32>
    %39 = tpu.matmul %36, %38, %cst_29 {dimension_numbers = #tpu.dot_dimension_numbers<[1], [0], [0], [1], [0, 0, 1, 1], [], []>} : vector<16x128xbf16>, vector<128x128xbf16>, vector<16x128xf32> -> vector<16x128xf32>
    %40 = arith.addf %25, %39 : vector<16x128xf32>
    %c0_30 = arith.constant 0 : index
    %c256 = arith.constant 256 : index
    %41 = vector.load %arg12[%c0_30, %c256] : memref<17x896xbf16, #tpu.memory_space<vmem>>, vector<16x384xbf16>
    %c0_31 = arith.constant 0 : index
    %c256_32 = arith.constant 256 : index
    %42 = vector.load %arg13[%c0_31, %c256_32] : memref<16x896xbf16, #tpu.memory_space<vmem>>, vector<16x384xbf16>
    %c1_33 = arith.constant 1 : index
    %c256_34 = arith.constant 256 : index
    %43 = vector.load %arg12[%c1_33, %c256_34] : memref<17x896xbf16, #tpu.memory_space<vmem>>, vector<16x384xbf16>
    %44 = tpu.concatenate %41, %42, %43 in 1 : vector<16x384xbf16>, vector<16x384xbf16>, vector<16x384xbf16> -> vector<16x1152xbf16>
    %c0_35 = arith.constant 0 : index
    %c0_36 = arith.constant 0 : index
    %45 = vector.load %arg6[%c0_35, %c0_36] : memref<1152x128xbf16, #tpu.memory_space<vmem>>, vector<1152x128xbf16>
    %cst_37 = arith.constant dense<0.000000e+00> : vector<16x128xf32>
    %46 = tpu.matmul %44, %45, %cst_37 {dimension_numbers = #tpu.dot_dimension_numbers<[1], [0], [0], [1], [0, 0, 1, 1], [], []>} : vector<16x1152xbf16>, vector<1152x128xbf16>, vector<16x128xf32> -> vector<16x128xf32>
    %47 = vector.broadcast %24 : vector<1x128xf32> to vector<16x128xf32>
    %48 = arith.addf %46, %47 : vector<16x128xf32>
    %cst_38 = arith.constant 0.000000e+00 : f32
    %49 = vector.broadcast %cst_38 : f32 to vector<16x128xf32>
    %50 = arith.maximumf %48, %49 : vector<16x128xf32>
    %51 = arith.truncf %50 : vector<16x128xf32> to vector<16x128xbf16>
    %c1_39 = arith.constant 1 : index
    %c0_40 = arith.constant 0 : index
    %c0_41 = arith.constant 0 : index
    %52 = vector.load %arg8[%c1_39, %c0_40, %c0_41] : memref<3x128x128xbf16, #tpu.memory_space<vmem>>, vector<1x128x128xbf16>
    %53 = vector.shape_cast %52 : vector<1x128x128xbf16> to vector<128x128xbf16>
    %cst_42 = arith.constant dense<0.000000e+00> : vector<16x128xf32>
    %54 = tpu.matmul %51, %53, %cst_42 {dimension_numbers = #tpu.dot_dimension_numbers<[1], [0], [0], [1], [0, 0, 1, 1], [], []>} : vector<16x128xbf16>, vector<128x128xbf16>, vector<16x128xf32> -> vector<16x128xf32>
    %55 = arith.addf %40, %54 : vector<16x128xf32>
    %c0_43 = arith.constant 0 : index
    %c512 = arith.constant 512 : index
    %56 = vector.load %arg12[%c0_43, %c512] : memref<17x896xbf16, #tpu.memory_space<vmem>>, vector<16x384xbf16>
    %c0_44 = arith.constant 0 : index
    %c512_45 = arith.constant 512 : index
    %57 = vector.load %arg13[%c0_44, %c512_45] : memref<16x896xbf16, #tpu.memory_space<vmem>>, vector<16x384xbf16>
    %c1_46 = arith.constant 1 : index
    %c512_47 = arith.constant 512 : index
    %58 = vector.load %arg12[%c1_46, %c512_47] : memref<17x896xbf16, #tpu.memory_space<vmem>>, vector<16x384xbf16>
    %59 = tpu.concatenate %56, %57, %58 in 1 : vector<16x384xbf16>, vector<16x384xbf16>, vector<16x384xbf16> -> vector<16x1152xbf16>
    %c0_48 = arith.constant 0 : index
    %c0_49 = arith.constant 0 : index
    %60 = vector.load %arg6[%c0_48, %c0_49] : memref<1152x128xbf16, #tpu.memory_space<vmem>>, vector<1152x128xbf16>
    %cst_50 = arith.constant dense<0.000000e+00> : vector<16x128xf32>
    %61 = tpu.matmul %59, %60, %cst_50 {dimension_numbers = #tpu.dot_dimension_numbers<[1], [0], [0], [1], [0, 0, 1, 1], [], []>} : vector<16x1152xbf16>, vector<1152x128xbf16>, vector<16x128xf32> -> vector<16x128xf32>
    %62 = vector.broadcast %24 : vector<1x128xf32> to vector<16x128xf32>
    %63 = arith.addf %61, %62 : vector<16x128xf32>
    %cst_51 = arith.constant 0.000000e+00 : f32
    %64 = vector.broadcast %cst_51 : f32 to vector<16x128xf32>
    %65 = arith.maximumf %63, %64 : vector<16x128xf32>
    %66 = arith.truncf %65 : vector<16x128xf32> to vector<16x128xbf16>
    %c2 = arith.constant 2 : index
    %c0_52 = arith.constant 0 : index
    %c0_53 = arith.constant 0 : index
    %67 = vector.load %arg8[%c2, %c0_52, %c0_53] : memref<3x128x128xbf16, #tpu.memory_space<vmem>>, vector<1x128x128xbf16>
    %68 = vector.shape_cast %67 : vector<1x128x128xbf16> to vector<128x128xbf16>
    %cst_54 = arith.constant dense<0.000000e+00> : vector<16x128xf32>
    %69 = tpu.matmul %66, %68, %cst_54 {dimension_numbers = #tpu.dot_dimension_numbers<[1], [0], [0], [1], [0, 0, 1, 1], [], []>} : vector<16x128xbf16>, vector<128x128xbf16>, vector<16x128xf32> -> vector<16x128xf32>
    %70 = arith.addf %55, %69 : vector<16x128xf32>
    %c0_55 = arith.constant 0 : index
    %c0_56 = arith.constant 0 : index
    %71 = vector.load %arg9[%c0_55, %c0_56] : memref<1x128xf32, #tpu.memory_space<vmem>>, vector<1x128xf32>
    %72 = vector.broadcast %71 : vector<1x128xf32> to vector<16x128xf32>
    %73 = arith.addf %70, %72 : vector<16x128xf32>
    %cst_57 = arith.constant 11.3137083 : f32
    %74 = vector.broadcast %cst_57 : f32 to vector<16x128xf32>
    %75 = arith.mulf %73, %74 : vector<16x128xf32>
    %c0_58 = arith.constant 0 : index
    %c0_59 = arith.constant 0 : index
    %76 = vector.load %arg10[%c0_58, %c0_59] : memref<16x128xf32, #tpu.memory_space<vmem>>, vector<16x128xf32>
    %77 = arith.addf %75, %76 : vector<16x128xf32>
    %c0_60 = arith.constant 0 : index
    %c0_61 = arith.constant 0 : index
    %c0_62 = arith.constant 0 : index
    %78 = vector.load %arg11[%c0_60, %c0_61, %c0_62] : memref<1x16x128xf32, #tpu.memory_space<vmem>>, vector<1x16x128xf32>
    %79 = vector.shape_cast %78 : vector<1x16x128xf32> to vector<16x128xf32>
    %80 = vector.shape_cast %77 : vector<16x128xf32> to vector<1x16x128xf32>
    tpu.vector_store %arg11[%c0_60, %c0_61, %c0_62], %80 {strides = array<i32>} : memref<1x16x128xf32, #tpu.memory_space<vmem>>, vector<1x16x128xf32>,
    return
  }
  func.func @transform_0(%arg0: i32, %arg1: i32) -> (i32, i32, i32) {
    %c0_i32 = arith.constant 0 : i32
    %c0_i32_0 = arith.constant 0 : i32
    %c0_i32_1 = arith.constant 0 : i32
    return %arg0, %c0_i32, %c0_i32_0 : i32, i32, i32
  }
  func.func @transform_1(%arg0: i32, %arg1: i32) -> (i32, i32, i32) {
    %c0_i32 = arith.constant 0 : i32
    %c0_i32_0 = arith.constant 0 : i32
    %c0_i32_1 = arith.constant 0 : i32
    return %arg0, %c0_i32, %c0_i32_0 : i32, i32, i32
  }
  func.func @transform_2(%arg0: i32, %arg1: i32) -> (i32, i32) {
    %c0_i32 = arith.constant 0 : i32
    %c0_i32_0 = arith.constant 0 : i32
    %c0_i32_1 = arith.constant 0 : i32
    return %c0_i32, %c0_i32_0 : i32, i32
  }
  func.func @transform_3(%arg0: i32, %arg1: i32) -> (i32, i32) {
    %c0_i32 = arith.constant 0 : i32
    %c0_i32_0 = arith.constant 0 : i32
    %c0_i32_1 = arith.constant 0 : i32
    return %c0_i32, %c0_i32_0 : i32, i32
  }
  func.func @transform_4(%arg0: i32, %arg1: i32) -> (i32, i32) {
    %c0_i32 = arith.constant 0 : i32
    %c0_i32_0 = arith.constant 0 : i32
    %c0_i32_1 = arith.constant 0 : i32
    return %c0_i32, %c0_i32_0 : i32, i32
  }
  func.func @transform_5(%arg0: i32, %arg1: i32) -> (i32, i32) {
    %c0_i32 = arith.constant 0 : i32
    %c0_i32_0 = arith.constant 0 : i32
    %c0_i32_1 = arith.constant 0 : i32
    return %c0_i32, %c0_i32_0 : i32, i32
  }
  func.func @transform_6(%arg0: i32, %arg1: i32) -> (i32, i32, i32) {
    %c0_i32 = arith.constant 0 : i32
    %c0_i32_0 = arith.constant 0 : i32
    %c0_i32_1 = arith.constant 0 : i32
    %c0_i32_2 = arith.constant 0 : i32
    return %c0_i32, %c0_i32_0, %c0_i32_1 : i32, i32, i32
  }
  func.func @transform_7(%arg0: i32, %arg1: i32) -> (i32, i32) {
    %c0_i32 = arith.constant 0 : i32
    %c0_i32_0 = arith.constant 0 : i32
    %c0_i32_1 = arith.constant 0 : i32
    return %c0_i32, %c0_i32_0 : i32, i32
  }
  func.func @transform_8(%arg0: i32, %arg1: i32) -> (i32, i32) {
    %c0_i32 = arith.constant 0 : i32
    %c0_i32_0 = arith.constant 0 : i32
    return %arg1, %c0_i32 : i32, i32
  }
  func.func @transform_9(%arg0: i32, %arg1: i32) -> (i32, i32, i32) {
    %c0_i32 = arith.constant 0 : i32
    %c0_i32_0 = arith.constant 0 : i32
    return %arg0, %arg1, %c0_i32 : i32, i32, i32
  }
}

</mosaic_0001>

<bundles_post_ra>
// kernel: tpu_custom_call.1
= control target key start
LH: loop header
LB: loop body
LE: loop exit
PB: predicated region body
PF: predicated region fallthrough
CT: control target
= control target key end

     0   :  { %s5258_s0 = inlined_call_operand.vmem [shape: bf16[2,65,48], index: 0, kind: input, shape index: {}]   ;;  %s5259_s1 = inlined_call_operand.vmem [shape: bf16[2,65,48], index: 1, kind: input, shape index: {}]   ;;  %s5260_s2 = inlined_call_operand.hbm [shape: bf16[48,896], index: 2, kind: input, shape index: {}]   ;;  %s5261_s3 = inlined_call_operand.hbm [shape: f32[1,896], index: 3, kind: input, shape index: {}]   ;;  %s5262_s4 = inlined_call_operand.hbm [shape: bf16[1152,128], index: 4, kind: input, shape index: {}]   ;;  %s5263_s5 = inlined_call_operand.vmem [shape: f32[1,128], index: 5, kind: input, shape index: {}]   ;;  %s5264_s6 = inlined_call_operand.vmem [shape: bf16[3,128,128], index: 6, kind: input, shape index: {}]   ;;  %s5265_s7 = inlined_call_operand.vmem [shape: f32[1,128], index: 7, kind: input, shape index: {}]   ;;  %s5266_s8 = inlined_call_operand.vmem [shape: f32[64,128], index: 8, kind: input, shape index: {}]   ;;  %s5267_s9 = inlined_call_operand.hbm [shape: f32[2,64,128], index: 9, kind: output, shape index: {}]  }
   0x1   :  { %5315 = sst [smem:[#allocation55_spill]] %s5261_s3 }
   0x2   :  { %14 = vsyncpa [#allocation5], 0 }
   0x3   :  { %15 = vsyncpa [#allocation8], 0 }
   0x4   :  { %16 = vsyncpa [#allocation6], 0 }
   0x5   :  { %18 = vsyncpa [#allocation6 + $0x1], 0  ;;  %s4318_s30 = smov 0   ;;  %s4320_s10 = smov 0  }
   0x6   :  { %s4322_s11 = smov 0   ;;  %s4324_s12 = smov 0  }
   0x7   :  { %s4326_s13 = smov 0   ;;  %s4328_s14 = smov 0  }
   0x8   :  { %s4330_s15 = smov 0   ;;  %s4332_s16 = smov 0  }
   0x9 LB: > { %5316 = sst [smem:[#allocation14_spill]] %s4225_s30  ;;  %s3066_s17 = sadd.s32 4294967295, %s4253_s16   ;;  %s4253_s16 = sphi %s4332_s16, %s24_s16   ;;  %s4249_s15 = sphi %s4330_s15, %s5418_s15   ;;  %s4245_s14 = sphi %s4328_s14, %s5421_s14   ;;  %s4241_s13 = sphi %s4326_s13, %s5416_s13   ;;  %s4237_s12 = sphi %s4324_s12, %s5415_s12   ;;  %s4233_s11 = sphi %s4322_s11, %s5414_s11   ;;  %s4229_s10 = sphi %s4320_s10, %s5420_s10   ;;  %s4225_s30 = sphi %s4318_s30, %s5419_s30  }
   0xa   : > { %5317 = sst [smem:[#allocation15_spill]] %s4233_s11  ;;  %s3067_s18 = sadd.s32 4294967294, %s4253_s16  }
   0xb   : > { %5318 = sst [smem:[#allocation16_spill]] %s4245_s14  ;;  %s33_s19 = sadd.s32 1, %s4245_s14 }
   0xc   : > { %5319 = sst [smem:[#allocation17_spill]] %s4249_s15  ;;  %s36_s20 = sadd.s32 1, %s4249_s15 }
   0xd   : > { %5320 = sst [smem:[#allocation18_spill]] %s4253_s16  ;;  %p34_p0 = scmp.ge.s32.totalorder %s33_s19, 4 }
   0xe   : > { %s249_s21 = sadd.s32 1, %s4233_s11  ;;  %p259_p1 = scmp.ne.s32.totalorder %s4233_s11, %s4229_s10 }
   0xf   : > { %p260_p2 = scmp.eq.s32.totalorder %s3066_s17, 7  ;;  %s5423_s19 = smov (%p34_p0, %s33_s19), 0 }
  0x10   : > { %5321 = sst [smem:[#allocation19_spill]] %s5423_s19  ;;  %s5425_s20 = smov (!%p34_p0, %s36_s20), %s4249_s15 }
  0x11   : > { %s245_s22 = ssub.s32 %s4245_s14, %s5423_s19  ;;  %p4370_p3 = por %p260_p2, %p259_p1 }
  0x12   : > { %p38_p4 = scmp.ge.s32.totalorder %s5425_s20, 2  ;;  %p265_p5 = scmp.ne.s32.totalorder %s4229_s10, %s4225_s30 }
  0x13   : > { %s5322_s23 = scalar_select %p4370_p3, 1, 0 }
  0x14   : > { %p266_p6 = scmp.eq.s32.totalorder %s3067_s18, 7  ;;  %p3068_p7 = scmp.ge.s32.totalorder %s4253_s16, 1 }
  0x15   : > { %s5427_s20 = smov (%p38_p4, %s5425_s20), 0  ;;  %p273_p9 = scmp.lt.s32.totalorder %s4253_s16, 9 }
  0x16   : > { %5323 = sst [smem:[#allocation20_spill]] %s5427_s20  ;;  %p4379_p8 = por %p266_p6, %p265_p5 }
  0x17   : > { %s244_s25 = ssub.s32 %s4249_s15, %s5427_s20  ;;  %p4386_p10 = pnand %p3068_p7, %p273_p9 }
  0x18   : > { %s5324_s24 = scalar_select %p4379_p8, 1, 0 }
  0x19   : > { %s246_s26 = sor.u32 %s245_s22, %s244_s25  ;;  %p4390_p12 = scmp.eq.s32.totalorder %s3066_s17, 0 }
  0x1a   : > { %5325 = sst [smem:[#allocation21_spill]] %s5324_s24  ;;  %p247_p11 = scmp.eq.s32.totalorder %s246_s26, 0 }
  0x1b   : > { %s5326_s27 = scalar_select %p4386_p10, 1, 0 }
  0x1c   : > { %s5327_s28 = scalar_select %p4390_p12, 1, 0 }
  0x1d   : > { %p3781_p13 = pneg %p4386_p10  ;;  %s4255_s22 = smov [#allocation7]  }
  0x1e   : > { %s4397_s29 = scalar_select %p247_p11, %s4233_s11, %s249_s21  }
  0x1f   : > { %p4401_p0 = pnand %p4390_p12, %p3781_p13  ;;  %s299_s25 = sshll.u32 %s4255_s22, 4  ;;  %s300_s25 = int_to_ptr.vmem [resolvable:$true] %s299_s25 }
  0x20   : > { %5328 = sst [smem:[#allocation22_spill]] %s4397_s29  ;;  %s5330_s3 = sld [smem:[#allocation55_spill]] }
  0x21   : > { %p4413_p2 = pneg %p4401_p0 }
  0x26   : > { %s4067_s17 = scalar_lea.hbm %s5330_s3, 112 }
  0x27   : > { %p4068_p1 = scmp.ne.s32.totalorder %s5330_s3, %s4067_s17  ;;  %p4074_p6 = scmp.lt.u32.totalorder %s4067_s17, %s5330_s3 }
  0x29   : > { %p4070_p4 = pnand %p4413_p2, %p4068_p1 }
  0x2b   : > { %p4071_p5 = pneg %p4070_p4 }
  0x2d   : > { %p4076_p7 = pnand %p4074_p6, %p4071_p5 }
  0x2f   : > { %4079 = shalt.err (!%p4076_p7)
}
  0x30   : > { %s4080_s20 = scalar_lea.vmem %s300_s25, 112  ;;  %s4087_s15 = scalar_lea.vmem %s300_s25, 128 }
  0x31   : > { %p4081_p9 = scmp.ne.s32.totalorder %s300_s25, %s4080_s20  ;;  %p4088_p8 = scmp.lt.s32.totalorder %s300_s25, %s300_s25 }
  0x32   : > { %p4089_p3 = scmp.lt.s32.totalorder %s4087_s15, %s4080_s20 }
  0x33   : > { %p4083_p11 = pnand %p4081_p9, %p4413_p2 }
  0x34   : > { %p4090_p12 = por %p4089_p3, %p4088_p8 }
  0x35   : > { %p4084_p13 = pneg %p4083_p11 }
  0x37   : > { %p4091_p10 = pnand %p4090_p12, %p4084_p13 }
  0x39   : > { %4094 = shalt.err (!%p4091_p10)
}
  0x3a   : > { %3787 = dma.hbm_to_vmem [thread:$0]  (!%p4401_p0), %s5330_s3, 112, %s300_s25, [#allocation8]  }
  0x3b   : > { %s4256_s14 = smov [#allocation4]   ;;  %s4095_s11 = scalar_lea.hbm %s5260_s2, 2688 }
  0x3c   : > { %s285_s17 = sshll.u32 %s4256_s14, 4  ;;  %p4096_p3 = scmp.ne.s32.totalorder %s5260_s2, %s4095_s11  ;;  %s286_s17 = int_to_ptr.vmem [resolvable:$true] %s285_s17 }
  0x3d   : > { %p4102_p12 = scmp.lt.u32.totalorder %s4095_s11, %s5260_s2 }
  0x3e   : > { %p4098_p8 = pnand %p4096_p3, %p4413_p2 }
  0x40   : > { %p4099_p10 = pneg %p4098_p8 }
  0x42   : > { %p4104_p1 = pnand %p4102_p12, %p4099_p10 }
  0x44   : > { %4107 = shalt.err (!%p4104_p1)
}
  0x45   : > { %s4108_s25 = scalar_lea.vmem %s286_s17, 2688  ;;  %p4116_p7 = scmp.lt.s32.totalorder %s286_s17, %s286_s17 }
  0x46   : > { %p4109_p4 = scmp.ne.s32.totalorder %s286_s17, %s4108_s25  ;;  %p4117_p9 = scmp.lt.s32.totalorder %s4108_s25, %s4108_s25 }
  0x48   : > { %p4111_p5 = pnand %p4109_p4, %p4413_p2  ;;  %p4118_p11 = por %p4117_p9, %p4116_p7 }
  0x4a   : > { %p4112_p6 = pneg %p4111_p5 }
  0x4c   : > { %p4119_p13 = pnand %p4118_p11, %p4112_p6 }
  0x4e   : > { %4122 = shalt.err (!%p4119_p13)
}
  0x4f   : > { %s4257_s30 = smov 448   ;;  %s4258_s24 = smov 28  }
  0x50   : > { %3784 = dma.hbm_to_vmem [thread:$0]  (!%p4401_p0), %s5260_s2, 2688, %s286_s17, [#allocation5], %s4257_s30, %s4257_s30, %s4258_s24  }
  0x51   : > { %s4259_s19 = smov [#allocation9]   ;;  %s4123_s20 = scalar_lea.hbm %s5262_s4, 9216 }
  0x52   : > { %s309_s26 = sshll.u32 %s4259_s19, 4  ;;  %p4124_p3 = scmp.ne.s32.totalorder %s5262_s4, %s4123_s20  ;;  %s310_s26 = int_to_ptr.vmem [resolvable:$true] %s309_s26 }
  0x53   : > { %p4130_p12 = scmp.lt.u32.totalorder %s4123_s20, %s5262_s4 }
  0x54   : > { %p4126_p8 = pnand %p4124_p3, %p4413_p2 }
  0x56   : > { %p4127_p10 = pneg %p4126_p8 }
  0x58   : > { %p4132_p1 = pnand %p4130_p12, %p4127_p10 }
  0x5a   : > { %4135 = shalt.err (!%p4132_p1)
}
  0x5b   : > { %s4136_s17 = scalar_lea.vmem %s310_s26, 9216  ;;  %p4144_p7 = scmp.lt.s32.totalorder %s310_s26, %s310_s26 }
  0x5c   : > { %p4137_p4 = scmp.ne.s32.totalorder %s310_s26, %s4136_s17  ;;  %p4145_p9 = scmp.lt.s32.totalorder %s4136_s17, %s4136_s17 }
  0x5e   : > { %p4139_p5 = pnand %p4137_p4, %p4413_p2  ;;  %p4146_p11 = por %p4145_p9, %p4144_p7 }
  0x60   : > { %p4140_p6 = pneg %p4139_p5 }
  0x62   : > { %p4147_p13 = pnand %p4146_p11, %p4140_p6 }
  0x64   : > { %4150 = shalt.err (!%p4147_p13)
}
  0x65   : > { %s4260_s30 = smov 64   ;;  %s4261_s24 = smov 4  }
  0x66   : > { %3790 = dma.hbm_to_vmem [thread:$0]  (!%p4401_p0), %s5262_s4, 9216, %s310_s26, [#allocation8], %s4260_s30, %s4260_s30, %s4261_s24  }
  0x67   : > { %p5332_p3 = scmp.ne.s32.totalorder %s5326_s27, 0 }
  0x69   : > { %359 = sbr.rel (%p5332_p3) target bundleno = 1281 (0x501), region = 56 }
  0x70   : > { %p5333_p8 = scmp.ne.s32.totalorder %s5327_s28, 0 }
  0x72   : > { %4212 = dma.done.wait (%p5333_p8), [#allocation5], 2688  }
  0x73   : > { %4214 = vsyncadd (%p5333_p8), [#allocation5], 4294964608 }
  0x74   : > { %4216 = dma.done.wait (%p5333_p8), [#allocation8], 9328  }
  0x75   : > { %4218 = vsyncadd (%p5333_p8), [#allocation8], 4294957968  ;;  %p413_p2 = scmp.lt.s32.totalorder %s4241_s13, 1  ;;  %v4262_v0 = vmov 0   ;;  %s3082_s27 = sshll.u32 %s4237_s12, 4  ;;  %vm616_vm0 = vcmask 392192   ;;  %v465_v60 = vlaneseq }
  0x76   : > { %655 = vmatprep.mubr.bf16.mxu0 %v4262_v0  ;;  %706 = vmatprep.mubr.bf16.mxu1 %v4262_v0  ;;  %v3878_v1 = vld [vmem:[#allocation4 + $0x4] ss:$28 sps:$4 sm:$0xff]   ;;  %v3880_v2 = vld [vmem:[#allocation4 + $0xc] ss:$28 sps:$4 sm:$0xff]   ;;  %s4483_s21 = sshra.s32 %s3082_s27, 3  ;;  %v5281_v25 = vmov 0.0  }
  0x77   : > { %s4479_s16 = scalar_select %p413_p2, %s4241_s13, 1  ;;  %623 = vmatprep.subr.bf16.mxu0 %v3878_v1  ;;  %v3882_v3 = vld [vmem:[#allocation4] ss:$28 sps:$4 sm:$0xff]   ;;  %v4485_v4 = vld [vmem:[#allocation4 + $0x8] ss:$28 sps:$4 sm:$0xff]   ;;  %674 = vmatprep.subr.bf16.mxu1 %v3880_v2  ;;  %v3911_v26 = vld [vmem:[#allocation9 + $0x40] sm:$0xff]  }
  0x78   : > { %v3884_v5 = vld [vmem:[#allocation4 + $0x3c] ss:$28 sps:$4 sm:$0xff]   ;;  %624 = vmatpush1.bf16.msra.mxu0 %v3882_v3  ;;  %675 = vmatpush1.bf16.msra.mxu1 %v4485_v4  ;;  %v3886_v6 = vld [vmem:[#allocation4 + $0x44] ss:$28 sps:$4 sm:$0xff]   ;;  %s3083_s26 = sshll.u32 %s4483_s21, 2  ;;  %v4530_v27 = vld [vmem:[#allocation9] sm:$0xff]  }
  0x79   : > { %s3766_s18 = smul.u32 36, %s4479_s16  ;;  %v3888_v7 = vld [vmem:[#allocation4 + $0x38] ss:$28 sps:$4 sm:$0xff]   ;;  %625 = vmatprep.subr.bf16.mxu0 %v3884_v5  ;;  %v3889_v8 = vld [vmem:[#allocation4 + $0x40] ss:$28 sps:$4 sm:$0xff]   ;;  %676 = vmatprep.subr.bf16.mxu1 %v3886_v6  ;;  %v4549_v32 = vld [vmem:[#allocation9 + $0x58] sm:$0xff]  }
  0x7a   : > { %v3890_v9 = vld [vmem:[#allocation4 + $0x74] ss:$28 sps:$4 sm:$0xff]   ;;  %v3892_v10 = vld [vmem:[#allocation4 + $0x7c] ss:$28 sps:$4 sm:$0xff]   ;;  %v3906_v18 = vld [vmem:[#allocation4 + $0x4c] ss:$28 sps:$4 sm:$0xff]  }
  0x7b   : > { %s417_s19 = scalar_lea.vmem %s5258_s0, %s3766_s18  ;;  %v3894_v11 = vld [vmem:[#allocation4 + $0x70] ss:$28 sps:$4 sm:$0xff]   ;;  %v3895_v12 = vld [vmem:[#allocation4 + $0x78] ss:$28 sps:$4 sm:$0xff]   ;;  %s422_s15 = scalar_lea.vmem %s5259_s1, %s3766_s18  ;;  %v3900_v20 = vld [vmem:[#allocation4 + $0x88] ss:$28 sps:$4 sm:$0xff]  }
  0x7c   : > { %s460_s14 = scalar_lea.vmem %s417_s19, %s3083_s26  ;;  %626 = vmatpush1.bf16.msra.mxu0 %v3888_v7  ;;  %677 = vmatpush1.bf16.msra.mxu1 %v3889_v8  ;;  %v4494_v13 = vld [vmem:[#allocation4 + $0x18] ss:$28 sps:$4 sm:$0xff]   ;;  %v4502_v15 = vld [vmem:[#allocation4 + $0x50] ss:$28 sps:$4 sm:$0xff]   ;;  %s4505_s25 = scalar_lea.vmem %s422_s15, %s3083_s26  ;;  %v3904_v21 = vld [vmem:[#allocation4 + $0x48] ss:$28 sps:$4 sm:$0xff]  }
  0x7d   : > { %627 = vmatprep.subr.bf16.mxu0 %v3890_v9  ;;  %678 = vmatprep.subr.bf16.mxu1 %v3892_v10  ;;  %v3896_v14 = vld [vmem:[%s460_s14] sm:$0xff]   ;;  %v3899_v19 = vld [vmem:[%s460_s14 + $0x8] ss:$0 sps:$4 sm:$0x11]   ;;  %v3909_v22 = vld [vmem:[#allocation4 + $0x84] ss:$28 sps:$4 sm:$0xff]  }
  0x7e   : > { %v3903_v16 = vld [vmem:[#allocation4 + $0x14] ss:$28 sps:$4 sm:$0xff]   ;;  %v3907_v23 = vld [vmem:[#allocation4 + $0x80] ss:$28 sps:$4 sm:$0xff]   ;;  %v4551_v33 = vld [vmem:[#allocation9 + $0x18] sm:$0xff]   ;;  %vm4264_vm1 = vmmov 0  }
  0x7f   : > { %v3901_v17 = vld [vmem:[#allocation4 + $0x10] ss:$28 sps:$4 sm:$0xff]   ;;  %v4533_v28 = vld [vmem:[#allocation9 + $0x48] sm:$0xff]   ;;  %v4540_v30 = vld [vmem:[#allocation9 + $0x50] sm:$0xff]   ;;  %v4636_v61 = vshrl.u32 %v465_v60, 7  ;;  %vm926_vm2 = vcmask 1040384  }
  0x80   : > { %628 = vmatpush1.bf16.msra.mxu0 %v3894_v11  ;;  %679 = vmatpush1.bf16.msra.mxu1 %v3895_v12  ;;  %v3910_v24 = vld [vmem:[%s4505_s25] sm:$0xff]   ;;  %v4536_v29 = vld [vmem:[#allocation9 + $0x8] sm:$0xff]   ;;  %v4544_v31 = vld [vmem:[#allocation9 + $0x10] sm:$0xff]   ;;  %vm927_vm3 = vsmask.f32 256  ;;  %vm929_vm4 = vcmask 1044484  }
  0x81   : > { %3626 = vmatprep.subr.bf16.mxu1 %v4494_v13  ;;  %725 = vmatprep.subr.bf16.mxu0 %v3903_v16  ;;  %v4555_v34 = vld [vmem:[#allocation9 + $0x60] sm:$0xff]   ;;  %v4561_v36 = vld [vmem:[#allocation9 + $0x68] sm:$0xff]   ;;  %v4572_v39 = vld [vmem:[#allocation9 + $0x70] sm:$0xff]   ;;  %v467_v62 = vsub.s32 0, %v4636_v61  ;;  %v475_v63 = vsub.s32 2, %v4636_v61  ;;  %s3080_s22 = sshll.u32 %s4237_s12, 1 }
  0x82   : > { %v4557_v35 = vld [vmem:[#allocation9 + $0x20] sm:$0xff]   ;;  %v4563_v37 = vld [vmem:[#allocation9 + $0x28] sm:$0xff]   ;;  %5334 = vst [vmem:[#allocation23_spill] sm:$0xff] %v4572_v39  ;;  %v4576_v41 = vld [vmem:[#allocation9 + $0x30] sm:$0xff]   ;;  %vm930_vm5 = vsmask.f32 4352 }
  0x83   : > { %3107 = vmatmul.mubr.msk.bf16.vlgmr.msra.gmra.mrb[0].mxu0 %vm616_vm0, %v3896_v14  ;;  %3109 = vmatmul.mubr.msk.bf16.vlgmr.msra.gmra.mrb[0].mxu1 %vm616_vm0, %v3896_v14  ;;  %v4570_v38 = vld [vmem:[#allocation9 + $0xc0] sm:$0xff]   ;;  %5335 = vst [vmem:[#allocation24_spill] sm:$0xff] %v4576_v41  ;;  %v4582_v42 = vld [vmem:[#allocation9 + $0xc8] sm:$0xff]   ;;  %v4584_v43 = vld [vmem:[#allocation9 + $0x78] sm:$0xff]   ;;  %vm1189_vm9 = vsmask.f32 7424 }
  0x84   : > { %3627 = vmatpush3.bf16.msra.mxu1 %v4494_v13  ;;  %716 = vmatprep.mubr.bf16.mxu1 %v4262_v0  ;;  %v4574_v40 = vld [vmem:[#allocation9 + $0x80] sm:$0xff]   ;;  %5336 = vst [vmem:[#allocation25_spill] sm:$0xff] %v4584_v43  ;;  %v4586_v44 = vld [vmem:[#allocation9 + $0x88] sm:$0xff]   ;;  %v4588_v45 = vld [vmem:[#allocation9 + $0x38] sm:$0xff]   ;;  %p424_p0 = scmp.lt.s32.totalorder %s3080_s22, 7  ;;  %s410_s15 = sand.u32 1, %s4229_s10  }
  0x85   : > { %3628 = vmatprep.subr.bf16.mxu1 %v4502_v15  ;;  %665 = vmatprep.mubr.bf16.mxu0 %v4262_v0  ;;  %5337 = vst [vmem:[#allocation26_spill] sm:$0xff] %v4588_v45  ;;  %v4594_v46 = vld [vmem:[#allocation9 + $0xd0] sm:$0xff]   ;;  %v4596_v47 = vld [vmem:[#allocation9 + $0x140] sm:$0xff]   ;;  %v4603_v49 = vld [vmem:[#allocation9 + $0xd8] sm:$0xff]   ;;  %s3077_s17 = sshll.u32 %s410_s15, 4  ;;  %s3283_s30 = sshll.u32 %s4241_s13, 3 }
  0x86   : > { %726 = vmatpush1.bf16.msra.mxu0 %v3901_v17  ;;  %5338 = vst [vmem:[#allocation27_spill] sm:$0xff] %v4596_v47  ;;  %v4598_v48 = vld [vmem:[#allocation9 + $0x90] sm:$0xff]   ;;  %v4605_v50 = vld [vmem:[#allocation9 + $0x98] sm:$0xff]   ;;  %v4609_v51 = vld [vmem:[#allocation9 + $0xe0] sm:$0xff]   ;;  %s425_s20 = scalar_select %p424_p0, %s3080_s22, 7 }
  0x87   : > { %727 = vmatprep.subr.bf16.mxu0 %v3906_v18  ;;  %v4611_v52 = vld [vmem:[#allocation9 + $0xa0] sm:$0xff]   ;;  %v4615_v53 = vld [vmem:[#allocation9 + $0xe8] sm:$0xff]   ;;  %v4621_v55 = vld [vmem:[#allocation9 + $0xf0] sm:$0xff]   ;;  %s2928_s18 = sadd.s32 %s3283_s30, %s3080_s22  ;;  %s412_s13 = scalar_lea.vmem [#allocation10], %s3077_s17 }
  0x88   : > { %3629 = vmatpush3.bf16.msra.mxu1 %v4502_v15  ;;  %5339 = vst [vmem:[#allocation28_spill] sm:$0xff] %v4611_v52  ;;  %5340 = vst [vmem:[#allocation29_spill] sm:$0xff] %v4615_v53  ;;  %v4617_v54 = vld [vmem:[#allocation9 + $0xa8] sm:$0xff]   ;;  %v4623_v56 = vld [vmem:[#allocation9 + $0xb0] sm:$0xff]   ;;  %s3081_s25 = sshll.u32 %s425_s20, 3  ;;  %s3284_s12 = sshll.u32 %s2928_s18, 7 }
  0x89   : > { %3630 = vmatprep.subr.bf16.mxu1 %v3900_v20  ;;  %5341 = vst [vmem:[#allocation30_spill] sm:$0xff] %v4617_v54  ;;  %5342 = vst [vmem:[#allocation31_spill] sm:$0xff] %v4621_v55  ;;  %v4627_v57 = vld [vmem:[#allocation9 + $0xf8] sm:$0xff]   ;;  %v4633_v59 = vld [vmem:[#allocation9 + $0x1c0] sm:$0xff]   ;;  %s427_s27 = scalar_lea.vmem %s5266_s8, %s3081_s25  ;;  %s2931_s21 = sshll.u32 %s412_s13, 4  ;;  %s5204_s21 = int_to_ptr.vmem [resolvable:$true] %s2931_s21 }
  0x8a   : > { %728 = vmatpush1.bf16.msra.mxu0 %v3904_v21  ;;  %5343 = vst [vmem:[#allocation32_spill] sm:$0xff] %v4623_v56  ;;  %5344 = vst [vmem:[#allocation33_spill] sm:$0xff] %v4627_v57  ;;  %v4629_v58 = vld [vmem:[#allocation9 + $0xb8] sm:$0xff]   ;;  %s5202_s19 = scalar_lea.hbm %s5267_s9, %s3284_s12  ;;  %s5206_s26 = scalar_lea.sflag [#allocation6], %s410_s15 }
  0x8b   : > { %3110 = vmatmul.mubr.msk.bf16.gmra.mrb[4].mxu1 %vm616_vm0, %v3899_v19  ;;  %3108 = vmatmul.mubr.msk.bf16.gmra.mrb[4].mxu0 %vm616_vm0, %v3899_v19  ;;  %5345 = vst [vmem:[#allocation34_spill] sm:$0xff] %v4629_v58  ;;  %5346 = vst [vmem:[#allocation35_spill] sm:$0xff] %v4633_v59  ;;  %s4151_s14 = scalar_lea.vmem %s5204_s21, 256  ;;  %p5408_p12 = scmp.ne.s32.totalorder %s5322_s23, 0 }
  0x8c   : > { %3631 = vmatpush3.bf16.msra.mxu1 %v3900_v20  ;;  %3632 = vmatprep.mubr.msk.bf16.mxu1 %vm616_vm0, %v3896_v14  ;;  %vm4665_vm6 = vmand %vm926_vm2, %vm927_vm3  ;;  %p4152_p10 = scmp.ne.s32.totalorder %s5204_s21, %s4151_s14  ;;  %s4265_s22 = smov [#allocation10]  }
  0x8d   : > { %957 = vmatprep.subr.bf16.mxu1 %v3878_v1  ;;  %729 = vmatprep.subr.bf16.mxu0 %v3909_v22  ;;  %v471_v1 = vsub.s32 1, %v4636_v61  ;;  %vm4672_vm7 = vmand %vm929_vm4, %vm930_vm5  ;;  %s4155_s20 = sshll.u32 %s4265_s22, 4  ;;  %s4156_s20 = int_to_ptr.vmem [resolvable:$false] %s4155_s20 }
  0x8e   : > { %757 = vmatprep.mubr.bf16.mxu0 %v4262_v0  ;;  %730 = vmatpush1.bf16.msra.mxu0 %v3907_v23  ;;  %vm4695_vm8 = vmor %vm4672_vm7, %vm4665_vm6  ;;  %p4153_p1 = pnand %p4152_p10, %p5408_p12  ;;  %s4157_s25 = scalar_lea.vmem %s4156_s20, 512 }
  0x8f   : > { %1000 = vmatprep.subr.bf16.mxu0 %v3880_v2  ;;  %v479_v2 = vsub.s32 3, %v4636_v61  ;;  %p4158_p5 = scmp.lt.s32.totalorder %s5204_s21, %s4156_s20  ;;  %p4159_p6 = scmp.lt.s32.totalorder %s4157_s25, %s4151_s14 }
  0x90   : > { %p4154_p4 = pneg %p4153_p1 }
  0x91   : > { %p4160_p7 = por %p4159_p6, %p4158_p5 }
  0x93   : > { %3633 = vmatmul.mubr.msk.bf16.vlgmr.msra.gmra.mrb[8].mxu1 %vm616_vm0, %v3899_v19  ;;  %3111 = vmatmul.mubr.msk.bf16.vlgmr.msra.gmra.mrb[8].mxu0 %vm616_vm0, %v3896_v14  ;;  %p4161_p9 = pnand %p4160_p7, %p4154_p4 }
  0x94   : > { %958 = vmatpush1.bf16.msra.mxu1 %v3882_v3  ;;  %989 = vmatprep.mubr.bf16.mxu1 %v4262_v0 }
  0x95   : > { %959 = vmatprep.subr.bf16.mxu1 %v3884_v5  ;;  %1001 = vmatpush1.bf16.msra.mxu0 %v4485_v4 }
  0x96   : > { %767 = vmatprep.mubr.bf16.mxu0 %v4262_v0  ;;  %1002 = vmatprep.subr.bf16.mxu0 %v3886_v6 }
  0x98   : > { %960 = vmatpush1.bf16.msra.mxu1 %v3888_v7 }
  0x99   : > { %961 = vmatprep.subr.bf16.mxu1 %v3890_v9  ;;  %1003 = vmatpush1.bf16.msra.mxu0 %v3889_v8 }
  0x9a   : > { %1004 = vmatprep.subr.bf16.mxu0 %v3892_v10 }
  0x9b   : > { %3112 = vmatmul.mubr.msk.bf16.gmra.mrb[12].mxu0 %vm616_vm0, %v3899_v19 }
  0x9c   : > { %962 = vmatpush1.bf16.msra.mxu1 %v3894_v11  ;;  %1032 = vmatprep.mubr.bf16.mxu0 %v4262_v0 }
  0x9d   : > { %1043 = vmatprep.subr.bf16.mxu1 %v3903_v16  ;;  %1005 = vmatpush1.bf16.msra.mxu0 %v3895_v12 }
  0x9e   : > { %3636 = vmatprep.subr.bf16.mxu0 %v5281_v25 }
  0x9f   : > { %3129 = vmatmul.mubr.msk.bf16.vlgmr.msra.gmra.mrb[12].mxu1 %vm616_vm0, %v3910_v24 }
  0xa0   : > { %1044 = vmatpush1.bf16.msra.mxu1 %v3901_v17  ;;  %1075 = vmatprep.mubr.bf16.mxu1 %v4262_v0  ;;  %v4640_v0 = vld [vmem:[#allocation7] sm:$0xff] }
  0xa1   : > { %1045 = vmatprep.subr.bf16.mxu1 %v3906_v18  ;;  %v4645_v3 = vrot.slane %v4640_v0, %v467_v62  ;;  %v4648_v4 = vrot.slane %v4640_v0, %v475_v63  ;;  %v4651_v5 = vrot.slane %v4640_v0, %v471_v1  ;;  %v4654_v6 = vrot.slane %v4640_v0, %v479_v2 }
  0xa3   : > { %3130 = vmatmul.mubr.msk.bf16.vlgmr.msra.gmra.mrb[16].mxu0 %vm616_vm0, %v3910_v24 }
  0xa4   : > { %1046 = vmatpush1.bf16.msra.mxu1 %v3904_v21  ;;  %3637 = vmatpush3.bf16.msra.mxu0 %v4494_v13 }
  0xa5   : > { %1047 = vmatprep.subr.bf16.mxu1 %v3909_v22  ;;  %3638 = vmatprep.subr.bf16.mxu0 %v5281_v25 }
  0xa6   : > { %3642 = vmatprep.mubr.msk.bf16.mxu0 %vm4264_vm1, %v5281_v25 }
  0xa8   : > { %1048 = vmatpush1.bf16.msra.mxu1 %v3907_v23  ;;  %3639 = vmatpush3.bf16.msra.mxu0 %v4502_v15 }
  0xa9   : > { %3308 = vmatprep.subr.bf16.mxu1 %v3911_v26  ;;  %3640 = vmatprep.subr.bf16.mxu0 %v5281_v25 }
  0xab   : > { %3131 = vmatmul.mubr.msk.bf16.vlgmr.msra.gmra.mrb[16].mxu1 %vm616_vm0, %v3910_v24 }
  0xac   : > { %3309 = vmatpush3.bf16.msra.mxu1 %v4530_v27  ;;  %3641 = vmatpush3.bf16.msra.mxu0 %v3900_v20 }
  0xad   : > { %3310 = vmatprep.subr.bf16.mxu1 %v4533_v28  ;;  %3330 = vmatprep.subr.bf16.mxu0 %v4570_v38 }
  0xaf   : > { %3643 = vmatmul.mubr.msk.bf16.vlgmr.msra.gmra.mrb[20].mxu0 %vm616_vm0, %v3910_v24 }
  0xb0   : > { %3311 = vmatpush3.bf16.msra.mxu1 %v4536_v29  ;;  %3331 = vmatpush3.bf16.msra.mxu0 %v4574_v40 }
  0xb1   : > { %3312 = vmatprep.subr.bf16.mxu1 %v4540_v30  ;;  %3332 = vmatprep.subr.bf16.mxu0 %v4582_v42 }
  0xb4   : > { %3313 = vmatpush3.bf16.msra.mxu1 %v4544_v31  ;;  %3333 = vmatpush3.bf16.msra.mxu0 %v4586_v44 }
  0xb5   : > { %3314 = vmatprep.subr.bf16.mxu1 %v4549_v32  ;;  %3334 = vmatprep.subr.bf16.mxu0 %v4594_v46 }
  0xb8   : > { %3315 = vmatpush3.bf16.msra.mxu1 %v4551_v33  ;;  %3335 = vmatpush3.bf16.msra.mxu0 %v4598_v48 }
  0xb9   : > { %3316 = vmatprep.subr.bf16.mxu1 %v4555_v34  ;;  %3336 = vmatprep.subr.bf16.mxu0 %v4603_v49 }
  0xbc   : > { %3317 = vmatpush3.bf16.msra.mxu1 %v4557_v35  ;;  %3337 = vmatpush3.bf16.msra.mxu0 %v4605_v50 }
  0xbd   : > { %3318 = vmatprep.subr.bf16.mxu1 %v4561_v36  ;;  %3338 = vmatprep.subr.bf16.mxu0 %v4609_v51 }
  0xc0   : > { %3319 = vmatpush3.bf16.msra.mxu1 %v4563_v37  ;;  %3339 = vmatpush3.bf16.msra.mxu0 %v4611_v52 }
  0xc1   : > { %3320 = vmatprep.subr.bf16.mxu1 %v4572_v39  ;;  %3340 = vmatprep.subr.bf16.mxu0 %v4615_v53 }
  0xc4   : > { %3321 = vmatpush3.bf16.msra.mxu1 %v4576_v41  ;;  %3341 = vmatpush3.bf16.msra.mxu0 %v4617_v54 }
  0xc5   : > { %3322 = vmatprep.subr.bf16.mxu1 %v4584_v43  ;;  %3342 = vmatprep.subr.bf16.mxu0 %v4621_v55 }
  0xc8   : > { %3323 = vmatpush3.bf16.msra.mxu1 %v4588_v45  ;;  %3343 = vmatpush3.bf16.msra.mxu0 %v4623_v56 }
  0xc9   : > { %3352 = vmatprep.subr.bf16.mxu1 %v4596_v47  ;;  %3344 = vmatprep.subr.bf16.mxu0 %v4627_v57 }
  0xcc   : > { %3345 = vmatpush3.bf16.msra.mxu0 %v4629_v58 }
  0xcd   : > { %3374 = vmatprep.subr.bf16.mxu0 %v4633_v59 }
 0x156   : > { %v657_v7 = vpop.f32.mrb[0].mxu0  ;;  %v708_v8 = vpop.f32.mrb[0].mxu1 }
 0x157   : > { %v658_v9 = vadd.f32 %v657_v7, %v4645_v3  ;;  %v709_v10 = vadd.f32 %v708_v8, %v4648_v4  ;;  %v659_v11 = vpop.f32.mrb[1].mxu0  ;;  %v710_v12 = vpop.f32.mrb[1].mxu1 }
 0x158   : > { %v660_v13 = vadd.f32 %v659_v11, %v4651_v5  ;;  %v711_v14 = vadd.f32 %v710_v12, %v4654_v6  ;;  %v661_v15 = vpop.f32.mrb[2].mxu0  ;;  %v712_v16 = vpop.f32.mrb[2].mxu1 }
 0x159   : > { %v824_v17 = vmax.f32 %v658_v9, 0.0  ;;  %v826_v18 = vmax.f32 %v709_v10, 0.0  ;;  %v662_v19 = vadd.f32 %v661_v15, %v4645_v3  ;;  %v713_v20 = vadd.f32 %v712_v16, %v4648_v4  ;;  %v663_v21 = vpop.f32.mrb[3].mxu0  ;;  %v714_v22 = vpop.f32.mrb[3].mxu1 }
 0x15a   : > { %v825_v23 = vmax.f32 %v660_v13, 0.0  ;;  %v827_v24 = vmax.f32 %v711_v14, 0.0  ;;  %v664_v26 = vadd.f32 %v663_v21, %v4651_v5  ;;  %v715_v60 = vadd.f32 %v714_v22, %v4654_v6 }
 0x15b   : > { %v831_v62 = vmax.f32 %v662_v19, 0.0  ;;  %v833_v63 = vmax.f32 %v713_v20, 0.0  ;;  %v491_v16 = vsub.s32 6, %v4636_v61 }
 0x15c   : > { %v3288_v1 = vpack.c.bf16 %v827_v24, %v826_v18  ;;  %v832_v2 = vmax.f32 %v664_v26, 0.0  ;;  %v834_v7 = vmax.f32 %v715_v60, 0.0 }
 0x15d   : > { %v4677_v26 = vpack.c.bf16 %v831_v62, %v824_v17  ;;  %v4685_v58 = vpack.c.bf16 %v833_v63, %v826_v18  ;;  %v483_v17 = vsub.s32 4, %v4636_v61  ;;  %v933_v62 = vld [vmem:[#allocation2 + $0x38] sm:$0x11]  ;;  %v4700_v18 = vrot.slane %v4640_v0, %v491_v16 }
 0x15e   : > { %919 = vst [vmem:[#allocation2 + $0x8] sm:$0xff] %v3288_v1  ;;  %v3292_v8 = vpack.c.bf16 %v834_v7, %v833_v63  ;;  %v718_v9 = vpop.f32.mrb[4].mxu1  ;;  %v667_v10 = vpop.f32.mrb[4].mxu0  ;;  %v4679_v60 = vpack.c.bf16 %v832_v2, %v825_v23  ;;  %v4681_v1 = vld [vmem:[#allocation9 + $0x100] sm:$0xff]   ;;  %v4687_v57 = vpack.c.bf16 %v834_v7, %v827_v24  ;;  %v487_v24 = vsub.s32 5, %v4636_v61  ;;  %v4705_v7 = vld [vmem:[#allocation9 + $0x108] sm:$0xff]  }
 0x15f   : > { %v719_v11 = vadd.f32 %v718_v9, %v4648_v4  ;;  %v720_v12 = vpop.f32.mrb[5].mxu1  ;;  %v668_v14 = vadd.f32 %v667_v10, %v4645_v3  ;;  %v669_v15 = vpop.f32.mrb[5].mxu0  ;;  %5351 = vst [vmem:[#allocation36_spill] sm:$0xff] %v4681_v1  ;;  %5353 = vst [vmem:[#allocation38_spill] sm:$0xff] %v4685_v58 }
 0x160   : > { %923 = vst [vmem:[#allocation2 + $0x24] sm:$0xff] %v3292_v8  ;;  %v721_v19 = vadd.f32 %v720_v12, %v4654_v6  ;;  %v722_v21 = vpop.f32.mrb[6].mxu1  ;;  %v670_v22 = vadd.f32 %v669_v15, %v4651_v5  ;;  %v671_v9 = vpop.f32.mrb[6].mxu0  ;;  %v4683_v8 = vld [vmem:[#allocation9 + $0x148] sm:$0xff]   ;;  %1843 = vmatprep.mubr.bf16.mxu1 %v4679_v60  ;;  %5356 = vst [vmem:[#allocation39_spill] sm:$0xff] %v4705_v7  ;;  %v4719_v20 = vrot.slane %v4640_v0, %v487_v24 }
 0x161   : > { %v840_v10 = vmax.f32 %v719_v11, 0.0  ;;  %v838_v25 = vmax.f32 %v668_v14, 0.0  ;;  %v723_v59 = vpop.f32.mrb[7].mxu1  ;;  %5352 = vst [vmem:[#allocation37_spill] sm:$0xff] %v4683_v8  ;;  %v672_v12 = vpop.f32.mrb[7].mxu0  ;;  %1844 = vmatmul.mubr.bf16.vlgmr.msra.gmra.mrb[20].mxu1 %v4677_v26  ;;  %v4708_v11 = vld [vmem:[#allocation9 + $0x150] sm:$0xff]  }
 0x162   : > { %v841_v21 = vmax.f32 %v721_v19, 0.0  ;;  %v839_v56 = vmax.f32 %v670_v22, 0.0  ;;  %v936_v59 = vld [vmem:[#allocation2 + $0x40] sm:$0x11]  ;;  %3353 = vmatpush3.bf16.msra.mxu1 %v4681_v1  ;;  %5357 = vst [vmem:[#allocation40_spill] sm:$0xff] %v4708_v11  ;;  %v4715_v19 = vrot.slane %v4640_v0, %v483_v17 }
 0x163   : > { %3354 = vmatprep.subr.bf16.mxu1 %v4683_v8 }
 0x164   : > { %v3296_v63 = vpack.c.bf16 %v841_v21, %v840_v10  ;;  %v3295_v2 = vpack.c.bf16 %v839_v56, %v838_v25  ;;  %v4723_v10 = vld [vmem:[#allocation9 + $0x110] sm:$0xff]  }
 0x165   : > { %5358 = vst [vmem:[#allocation41_spill] sm:$0xff] %v4723_v10 }
 0x166   : > { %v937_v14 = vsel %vm4695_vm8, %v3296_v63, %v936_v59  ;;  %v934_v15 = vsel %vm4695_vm8, %v3295_v2, %v933_v62  ;;  %v3634_v16 = vpop.f32.mrb[8].mxu1  ;;  %v759_v61 = vpop.f32.mrb[8].mxu0  ;;  %3355 = vmatpush3.bf16.msra.mxu1 %v4705_v7  ;;  %v4729_v62 = vld [vmem:[#allocation9 + $0x158] sm:$0xff]   ;;  %v942_v63 = vld [vmem:[#allocation2 + $0x50] sm:$0x1] }
 0x167   : > { %938 = vst [vmem:[#allocation2 + $0x40] sm:$0x11] %v937_v14  ;;  %935 = vst [vmem:[#allocation2 + $0x38] sm:$0x11] %v934_v15  ;;  %v819_v25 = vadd.f32 %v3634_v16, %v4700_v18  ;;  %v810_v56 = vpop.f32.mrb[9].mxu1  ;;  %v4726_v12 = vadd.f32 %v759_v61, %v4715_v19  ;;  %v761_v21 = vpop.f32.mrb[9].mxu0  ;;  %3356 = vmatprep.subr.bf16.mxu1 %v4708_v11 }
 0x168   : > { %v811_v22 = vadd.f32 %v810_v56, %v4700_v18  ;;  %v3635_v9 = vpop.f32.mrb[10].mxu1  ;;  %5359 = vst [vmem:[#allocation42_spill] sm:$0xff] %v4729_v62  ;;  %v762_v0 = vadd.f32 %v761_v21, %v4719_v20  ;;  %v763_v24 = vpop.f32.mrb[10].mxu0  ;;  %v4740_v21 = vld [vmem:[#allocation9 + $0x118] sm:$0xff]  }
 0x169   : > { %v844_v17 = vmax.f32 %v819_v25, 0.0  ;;  %v813_v59 = vpop.f32.mrb[11].mxu1  ;;  %v5292_v15 = vmax.f32 %v4726_v12, 0.0  ;;  %v4735_v16 = vadd.f32 %v763_v24, %v4715_v19  ;;  %v765_v56 = vpop.f32.mrb[11].mxu0  ;;  %v1205_v25 = vshll.u32 %v4679_v60, 16  ;;  %5360 = vst [vmem:[#allocation43_spill] sm:$0xff] %v4740_v21 }
 0x16a   : > { %v830_v2 = vmax.f32 %v811_v22, 0.0  ;;  %v814_v14 = vadd.f32 %v813_v59, %v4700_v18  ;;  %v829_v9 = vmax.f32 %v762_v0, 0.0  ;;  %v766_v11 = vadd.f32 %v765_v56, %v4719_v20  ;;  %3357 = vmatpush3.bf16.msra.mxu1 %v4723_v10  ;;  %v4749_v56 = vld [vmem:[#allocation9 + $0x160] sm:$0xff]  }
 0x16b   : > { %v3298_v61 = vpack.c.bf16 %v844_v17, %v844_v17  ;;  %v2083_v59 = vshll.u32 %v4687_v57, 16  ;;  %3358 = vmatprep.subr.bf16.mxu1 %v4729_v62  ;;  %5361 = vst [vmem:[#allocation44_spill] sm:$0xff] %v4749_v56  ;;  %v5362_v13 = vmax.f32 %v4735_v16, 0.0  ;;  %v5366_v23 = vmax.f32 %v4726_v12, 0.0 }
 0x16c   : > { %v3290_v7 = vpack.c.bf16 %v830_v2, %v830_v2  ;;  %v837_v8 = vmax.f32 %v814_v14, 0.0  ;;  %v3289_v17 = vpack.c.bf16 %v829_v9, %v5292_v15  ;;  %v836_v0 = vmax.f32 %v766_v11, 0.0 }
 0x16d   : > { %v943_v24 = vsel %vm4665_vm6, %v3298_v61, %v942_v63  ;;  %v2071_v2 = vshll.u32 %v4685_v58, 16  ;;  %v1203_v15 = vshrl.u32 %v4679_v60, 16 }
 0x16e   : > { %944 = vst [vmem:[#allocation2 + $0x50] sm:$0x1] %v943_v24  ;;  %921 = vst [vmem:[#allocation2 + $0x18] sm:$0xf] %v3290_v7  ;;  %v3294_v14 = vpack.c.bf16 %v837_v8, %v837_v8  ;;  %v4752_v10 = vld [vmem:[#allocation2 + $0x38] sm:$0x11]  ;;  %v3293_v63 = vpack.c.bf16 %v836_v0, %v5362_v13  ;;  %3359 = vmatpush3.bf16.msra.mxu1 %v4740_v21  ;;  %v4769_v60 = vpack.c.bf16 %v836_v0, %v829_v9 }
 0x16f   : > { %v2042_v22 = vld [vmem:[#allocation2 + $0x40] sm:$0x11]  ;;  %920 = vst [vmem:[#allocation2 + $0x10] sm:$0xff] %v3289_v17  ;;  %v769_v61 = vpop.f32.mrb[12].mxu0  ;;  %v3137_v62 = vcombine.high %v4752_v10, %v4752_v10  ;;  %v1207_v17 = vrot.slane %v1205_v25, 1  ;;  %3360 = vmatprep.subr.bf16.mxu1 %v4749_v56  ;;  %v2085_v21 = vrot.slane %v2083_v59, 1 }
 0x170   : > { %v3216_v11 = vcombine.high %v2042_v22, %v2042_v22  ;;  %925 = vst [vmem:[#allocation2 + $0x34] sm:$0xf] %v3294_v14  ;;  %v770_v24 = vadd.f32 %v769_v61, %v4715_v19  ;;  %v4760_v7 = vld [vmem:[#allocation9 + $0x120] sm:$0xff]   ;;  %v771_v8 = vpop.f32.mrb[13].mxu0  ;;  %v3215_v1 = vcombine.low %v2042_v22, %v2042_v22  ;;  %924 = vst [vmem:[#allocation2 + $0x2c] sm:$0xff] %v3293_v63  ;;  %v4767_v14 = vld [vmem:[#allocation9 + $0x168] sm:$0xff]  }
 0x171   : > { %5363 = vst [vmem:[#allocation45_spill] sm:$0xff] %v4760_v7  ;;  %v772_v13 = vadd.f32 %v771_v8, %v4719_v20  ;;  %v4765_v47 = vshll.u32 %v3137_v62, 16  ;;  %v773_v55 = vpop.f32.mrb[14].mxu0  ;;  %v2073_v45 = vrot.slane %v2071_v2, 1  ;;  %5364 = vst [vmem:[#allocation46_spill] sm:$0xff] %v4769_v60  ;;  %v2081_v8 = vshrl.u32 %v4687_v57, 16 }
 0x172   : > { %v991_v61 = vpop.f32.mrb[12].mxu1  ;;  %v842_v54 = vmax.f32 %v770_v24, 0.0  ;;  %v774_v43 = vpop.f32.mrb[15].mxu0  ;;  %v2088_v53 = vshll.u32 %v3216_v11, 16  ;;  %v2076_v41 = vshll.u32 %v3215_v1, 16  ;;  %v2069_v62 = vshrl.u32 %v4685_v58, 16  ;;  %3361 = vmatpush3.bf16.msra.mxu1 %v4760_v7 }
 0x173   : > { %v992_v25 = vadd.f32 %v991_v61, %v4645_v3  ;;  %v993_v22 = vpop.f32.mrb[13].mxu1  ;;  %v843_v63 = vmax.f32 %v772_v13, 0.0  ;;  %v939_v59 = vld [vmem:[#allocation2 + $0x48] sm:$0x11]  ;;  %3362 = vmatprep.subr.bf16.mxu1 %v4767_v14  ;;  %v4780_v24 = vld [vmem:[#allocation9 + $0x170] sm:$0xff]   ;;  %v2086_v13 = vor.u32 %v2085_v21, %v2081_v8  ;;  %v1208_v52 = vor.u32 %v1207_v17, %v1203_v15 }
 0x174   : > { %v994_v55 = vadd.f32 %v993_v22, %v4651_v5  ;;  %v995_v56 = vpop.f32.mrb[14].mxu1  ;;  %v4776_v2 = vld [vmem:[#allocation9 + $0x128] sm:$0xff]   ;;  %v2090_v43 = vrot.slane %v2088_v53, 1  ;;  %v2078_v1 = vrot.slane %v2076_v41, 1  ;;  %v2074_v61 = vor.u32 %v2073_v45, %v2069_v62 }
 0x175   : > { %v996_v9 = vadd.f32 %v995_v56, %v4645_v3  ;;  %v997_v0 = vpop.f32.mrb[15].mxu1  ;;  %v3297_v11 = vpack.c.bf16 %v843_v63, %v842_v54  ;;  %v1127_v58 = vmax.f32 %v992_v25, 0.0  ;;  %v1212_v7 = vrot.slane %v4765_v47, 1  ;;  %v4794_v47 = vld [vmem:[#allocation9 + $0x130] sm:$0xff]   ;;  %v4802_v63 = vld [vmem:[#allocation9 + $0x180] sm:$0xff]  }
 0x176   : > { %v998_v22 = vadd.f32 %v997_v0, %v4651_v5  ;;  %v1034_v53 = vpop.f32.mrb[16].mxu0  ;;  %v4787_v3 = vsel %vm1189_vm9, %v2086_v13, %v2090_v43  ;;  %v4790_v54 = vsel %vm1189_vm9, %v2074_v61, %v2078_v1  ;;  %v1128_v56 = vmax.f32 %v994_v55, 0.0  ;;  %3363 = vmatpush3.bf16.msra.mxu1 %v4776_v2  ;;  %v4808_v43 = vld [vmem:[#allocation9 + $0x1c8] sm:$0xff]   ;;  %v4818_v61 = vld [vmem:[#allocation9 + $0x138] sm:$0xff]  }
 0x177   : > { %v1134_v39 = vmax.f32 %v996_v9, 0.0  ;;  %v940_v41 = vsel %vm4695_vm8, %v3297_v11, %v939_v59  ;;  %5365 = vst [vmem:[#allocation47_spill] sm:$0xff] %v4790_v54  ;;  %v1035_v45 = vadd.f32 %v1034_v53, %v4648_v4  ;;  %v1036_v5 = vpop.f32.mrb[17].mxu0  ;;  %v5367_v15 = vmax.f32 %v4735_v16, 0.0  ;;  %3364 = vmatprep.subr.bf16.mxu1 %v4780_v24  ;;  %v4806_v59 = vld [vmem:[#allocation2 + $0x8] ss:$28 sps:$4 sm:$0xff]  }
 0x178   : > { %v1135_v21 = vmax.f32 %v998_v22, 0.0  ;;  %941 = vst [vmem:[#allocation2 + $0x48] sm:$0x11] %v940_v41  ;;  %v1037_v8 = vadd.f32 %v1036_v5, %v4654_v6  ;;  %v1038_v62 = vpop.f32.mrb[18].mxu0  ;;  %v4811_v9 = vld [vmem:[#allocation9 + $0x178] sm:$0xff]   ;;  %v2558_v0 = vshll.u32 %v4769_v60, 16  ;;  %v1213_v11 = vsel %vm1189_vm9, %v1208_v52, %v1212_v7 }
 0x179   : > { %v4800_v17 = vpack.c.bf16 %v5367_v15, %v5366_v23  ;;  %v1141_v25 = vpack.c.bf16 %v1134_v39, %v1127_v58  ;;  %v1129_v1 = vmax.f32 %v1035_v45, 0.0  ;;  %v1039_v12 = vadd.f32 %v1038_v62, %v4648_v4  ;;  %v1040_v16 = vpop.f32.mrb[19].mxu0  ;;  %v4822_v22 = vld [vmem:[#allocation9 + $0x188] sm:$0xff]   ;;  %v4827_v53 = vld [vmem:[#allocation9 + $0x1d0] sm:$0xff]   ;;  %v4836_v23 = vld [vmem:[#allocation9 + $0x200] sm:$0xff]  }
 0x17a   : > { %v1142_v55 = vpack.c.bf16 %v1135_v21, %v1128_v56  ;;  %v1130_v39 = vmax.f32 %v1037_v8, 0.0  ;;  %v1041_v58 = vadd.f32 %v1040_v16, %v4654_v6  ;;  %3365 = vmatpush3.bf16.msra.mxu1 %v4794_v47  ;;  %v2556_v45 = vshrl.u32 %v4769_v60, 16  ;;  %v4850_v54 = vld [vmem:[#allocation9 + $0x208] sm:$0xff]  }
 0x17b   : > { %5368 = vst [vmem:[#allocation48_spill] sm:$0xff] %v4800_v17  ;;  %1884 = vmatprep.mubr.bf16.mxu0 %v1141_v25  ;;  %v1136_v13 = vmax.f32 %v1039_v12, 0.0  ;;  %v2546_v4 = vshll.u32 %v4800_v17, 16  ;;  %3366 = vmatprep.subr.bf16.mxu1 %v4811_v9  ;;  %v2560_v5 = vrot.slane %v2558_v0, 1  ;;  %v2544_v62 = vshrl.u32 %v4800_v17, 16  ;;  %v4841_v12 = vld [vmem:[#allocation9 + $0x190] sm:$0xff]  }
 0x17c   : > { %1885 = vmatmul.mubr.bf16.vlgmr.msra.gmra.mrb[24].mxu0 %v4806_v59  ;;  %v1137_v41 = vmax.f32 %v1041_v58, 0.0  ;;  %v5369_v16 = vmov 0.0  }
 0x17d   : > { %3375 = vmatpush3.bf16.msra.mxu0 %v4802_v63  ;;  %1966 = vmatprep.mubr.bf16.mxu0 %v1213_v11  ;;  %v4825_v6 = vpack.c.bf16 %v1136_v13, %v1129_v1  ;;  %v2548_v1 = vrot.slane %v2546_v4, 1  ;;  %v4846_v13 = vld [vmem:[#allocation9 + $0x1d8] sm:$0xff]   ;;  %v2561_v17 = vor.u32 %v2560_v5, %v2556_v45  ;;  %v4861_v45 = vld [vmem:[#allocation9 + $0x1e0] sm:$0xff]  }
 0x17e   : > { %3376 = vmatprep.subr.bf16.mxu0 %v4808_v43  ;;  %v1077_v52 = vpop.f32.mrb[16].mxu1  ;;  %v4830_v7 = vpack.c.bf16 %v1137_v41, %v1130_v39  ;;  %3367 = vmatpush3.bf16.msra.mxu1 %v4818_v61 }
 0x17f   : > { %v1078_v56 = vadd.f32 %v1077_v52, %v4715_v19  ;;  %v1079_v21 = vpop.f32.mrb[17].mxu1  ;;  %1925 = vmatprep.mubr.bf16.mxu1 %v4825_v6  ;;  %v2517_v8 = vld [vmem:[#allocation2 + $0x48] sm:$0x11]  ;;  %3646 = vmatprep.subr.bf16.mxu1 %v5369_v16 }
 0x180   : > { %v1080_v15 = vadd.f32 %v1079_v21, %v4719_v20  ;;  %v1081_v25 = vpop.f32.mrb[18].mxu1  ;;  %v3254_v11 = vcombine.high %v2517_v8, %v2517_v8  ;;  %v3253_v21 = vcombine.low %v2517_v8, %v2517_v8 }
 0x181   : > { %3377 = vmatpush3.bf16.msra.mxu0 %v4822_v22  ;;  %v1131_v39 = vmax.f32 %v1078_v56, 0.0  ;;  %v1082_v58 = vadd.f32 %v1081_v25, %v4715_v19  ;;  %v1083_v0 = vpop.f32.mrb[19].mxu1  ;;  %1926 = vmatmul.mubr.bf16.vlgmr.msra.gmra.mrb[24].mxu1 %v1142_v55  ;;  %v2549_v56 = vor.u32 %v2548_v1, %v2544_v62  ;;  %v4869_v62 = vld [vmem:[#allocation9 + $0x210] sm:$0xff]  }
 0x182   : > { %3378 = vmatprep.subr.bf16.mxu0 %v4827_v53  ;;  %v1132_v41 = vmax.f32 %v1080_v15, 0.0  ;;  %v1084_v52 = vadd.f32 %v1083_v0, %v4719_v20  ;;  %v2563_v60 = vshll.u32 %v3254_v11, 16  ;;  %3647 = vmatpush3.bf16.msra.mxu1 %v4836_v23  ;;  %v2551_v25 = vshll.u32 %v3253_v21, 16  ;;  %v4855_v15 = vld [vmem:[#allocation9 + $0x198] sm:$0xff]   ;;  %v4885_v0 = vld [vmem:[#allocation9 + $0x1a8] sm:$0xff]   ;;  %v4889_v11 = vld [vmem:[#allocation9 + $0x1f0] sm:$0xff]  }
 0x183   : > { %v1138_v4 = vmax.f32 %v1082_v58, 0.0  ;;  %3662 = vmatprep.mubr.msk.bf16.mxu1 %vm4264_vm1, %v5369_v16  ;;  %3648 = vmatprep.subr.bf16.mxu1 %v5369_v16  ;;  %v4895_v21 = vld [vmem:[#allocation9 + $0x220] sm:$0xff]  }
 0x184   : > { %v1139_v19 = vmax.f32 %v1084_v52, 0.0  ;;  %v2565_v55 = vrot.slane %v2563_v60, 1  ;;  %v2553_v8 = vrot.slane %v2551_v25, 1  ;;  %v4875_v60 = vld [vmem:[#allocation9 + $0x1a0] sm:$0xff]   ;;  %v1193_v52 = vshll.u32 %v4677_v26, 16  ;;  %5374 = vst [vmem:[#allocation53_spill] sm:$0xff] %v4895_v21 }
 0x185   : > { %3379 = vmatpush3.bf16.msra.mxu0 %v4841_v12  ;;  %v4858_v20 = vpack.c.bf16 %v1138_v4, %v1131_v39  ;;  %v4879_v39 = vld [vmem:[#allocation9 + $0x1e8] sm:$0xff]   ;;  %v4898_v4 = vld [vmem:[#allocation9 + $0x1b0] sm:$0xff]  }
 0x186   : > { %3380 = vmatprep.subr.bf16.mxu0 %v4846_v13  ;;  %v4863_v5 = vpack.c.bf16 %v1139_v19, %v1132_v41  ;;  %v4866_v58 = vsel %vm1189_vm9, %v2561_v17, %v2565_v55  ;;  %3649 = vmatpush3.bf16.msra.mxu1 %v4850_v54  ;;  %v4872_v1 = vsel %vm1189_vm9, %v2549_v56, %v2553_v8  ;;  %v4882_v17 = vld [vmem:[#allocation9 + $0x218] sm:$0xff]   ;;  %v1191_v56 = vshrl.u32 %v4677_v26, 16  ;;  %v4906_v55 = vld [vmem:[#allocation9 + $0x228] sm:$0xff]   ;;  %v4914_v26 = vld [vmem:[#allocation9 + $0x230] sm:$0xff]  }
 0x187   : > { %5371 = vst [vmem:[#allocation50_spill] sm:$0xff] %v4866_v58  ;;  %5372 = vst [vmem:[#allocation51_spill] sm:$0xff] %v4872_v1  ;;  %3650 = vmatprep.subr.bf16.mxu1 %v5369_v16  ;;  %v3136_v41 = vcombine.low %v4752_v10, %v4752_v10  ;;  %v4902_v19 = vld [vmem:[#allocation9 + $0x1f8] sm:$0xff]   ;;  %v1195_v25 = vrot.slane %v1193_v52, 1  ;;  %v4919_v52 = vld [vmem:[#allocation9 + $0x40] sm:$0xff]  }
 0x188   : > { %5370 = vst [vmem:[#allocation49_spill] sm:$0xff] %v4863_v5  ;;  %5373 = vst [vmem:[#allocation52_spill] sm:$0xff] %v4882_v17  ;;  %v4909_v8 = vld [vmem:[#allocation9 + $0x1b8] sm:$0xff]  }
 0x189   : > { %3381 = vmatpush3.bf16.msra.mxu0 %v4855_v15  ;;  %v1198_v10 = vshll.u32 %v3136_v41, 16  ;;  %v3986_v5 = vld [vmem:[#allocation2 + $0x40] ss:$0 sps:$4 sm:$0x11]   ;;  %v1196_v1 = vor.u32 %v1195_v25, %v1191_v56  ;;  %v1217_v41 = vshll.u32 %v4806_v59, 16  ;;  %5375 = vst [vmem:[#allocation54_spill] sm:$0xff] %v4919_v52 }
 0x18a   : > { %3382 = vmatprep.subr.bf16.mxu0 %v4861_v45  ;;  %3651 = vmatpush3.bf16.msra.mxu1 %v4869_v62  ;;  %v4924_v56 = vld [vmem:[#allocation9 + $0x238] sm:$0xff]  }
 0x18b   : > { %3652 = vmatprep.subr.bf16.mxu1 %v5369_v16  ;;  %v1200_v58 = vrot.slane %v1198_v10, 1  ;;  %v1219_v25 = vrot.slane %v1217_v41, 1  ;;  %v1215_v10 = vshrl.u32 %v4806_v59, 16  ;;  %v5388_v59 = vld [vmem:[#allocation33_spill] sm:$0xff]  ;;  %v5393_v41 = vld [vmem:[#allocation40_spill] sm:$0xff] }
 0x18d   : > { %3383 = vmatpush3.bf16.msra.mxu0 %v4875_v60 }
 0x18e   : > { %3384 = vmatprep.subr.bf16.mxu0 %v4879_v39  ;;  %3653 = vmatpush3.bf16.msra.mxu1 %v4882_v17  ;;  %v1201_v17 = vsel %vm1189_vm9, %v1196_v1, %v1200_v58  ;;  %v5390_v58 = vld [vmem:[#allocation34_spill] sm:$0xff]  ;;  %v5391_v1 = vld [vmem:[#allocation39_spill] sm:$0xff] }
 0x18f   : > { %3654 = vmatprep.subr.bf16.mxu1 %v5369_v16 }
 0x191   : > { %3385 = vmatpush3.bf16.msra.mxu0 %v4885_v0 }
 0x192   : > { %3386 = vmatprep.subr.bf16.mxu0 %v4889_v11  ;;  %3655 = vmatpush3.bf16.msra.mxu1 %v4895_v21  ;;  %v1222_v21 = vshll.u32 %v3986_v5, 16  ;;  %v1220_v5 = vor.u32 %v1219_v25, %v1215_v10  ;;  %v5395_v25 = vld [vmem:[#allocation42_spill] sm:$0xff]  ;;  %v5396_v10 = vld [vmem:[#allocation43_spill] sm:$0xff] }
 0x193   : > { %3656 = vmatprep.subr.bf16.mxu1 %v5369_v16 }
 0x195   : > { %3387 = vmatpush3.bf16.msra.mxu0 %v4898_v4 }
 0x196   : > { %3388 = vmatprep.subr.bf16.mxu0 %v4902_v19  ;;  %3657 = vmatpush3.bf16.msra.mxu1 %v4906_v55 }
 0x197   : > { %3658 = vmatprep.subr.bf16.mxu1 %v5369_v16 }
 0x199   : > { %3389 = vmatpush3.bf16.msra.mxu0 %v4909_v8 }
 0x19a   : > { %3405 = vmatprep.subr.bf16.mxu0 %v4919_v52  ;;  %3659 = vmatpush3.bf16.msra.mxu1 %v4914_v26  ;;  %v1224_v52 = vrot.slane %v1222_v21, 1  ;;  %v5392_v21 = vld [vmem:[#allocation35_spill] sm:$0xff] }
 0x19b   : > { %3660 = vmatprep.subr.bf16.mxu1 %v5369_v16 }
 0x19c   : > { %1967 = vmatmul.mubr.bf16.vlgmr.msra.gmra.mrb[28].mxu0 %v1201_v17  ;;  %v3987_v17 = vld [vmem:[#allocation2 + $0x10] ss:$28 sps:$4 sm:$0xff]  }
 0x19d   : > { %3406 = vmatpush3.bf16.msra.mxu0 %v4530_v27  ;;  %2139 = vmatprep.mubr.bf16.mxu0 %v4687_v57  ;;  %v1225_v27 = vsel %vm1189_vm9, %v1220_v5, %v1224_v52  ;;  %v5386_v57 = vld [vmem:[#allocation32_spill] sm:$0xff]  ;;  %v5394_v52 = vld [vmem:[#allocation41_spill] sm:$0xff] }
 0x19e   : > { %3407 = vmatprep.subr.bf16.mxu0 %v4533_v28  ;;  %3661 = vmatpush3.bf16.msra.mxu1 %v4924_v56  ;;  %v1120_v28 = vpop.f32.mrb[20].mxu0  ;;  %v5397_v5 = vld [vmem:[#allocation44_spill] sm:$0xff] }
 0x19f   : > { %3427 = vmatprep.subr.bf16.mxu1 %v4570_v38 }
 0x1a1   : > { %3408 = vmatpush3.bf16.msra.mxu0 %v4536_v29  ;;  %3663 = vmatmul.mubr.bf16.vlgmr.msra.gmra.mrb[28].mxu1 %v1225_v27  ;;  %v1121_v29 = vadd.f32 %v1120_v28, %v4700_v18  ;;  %v5398_v27 = vld [vmem:[#allocation45_spill] sm:$0xff] }
 0x1a2   : > { %3409 = vmatprep.subr.bf16.mxu0 %v4540_v30  ;;  %3428 = vmatpush3.bf16.msra.mxu1 %v4574_v40  ;;  %v3644_v30 = vpop.f32.mrb[21].mxu0  ;;  %v5401_v28 = vld [vmem:[#allocation53_spill] sm:$0xff] }
 0x1a3   : > { %2180 = vmatprep.mubr.bf16.mxu1 %v4825_v6  ;;  %3429 = vmatprep.subr.bf16.mxu1 %v4582_v42  ;;  %v5377_v42 = vld [vmem:[#allocation28_spill] sm:$0xff]  ;;  %v5389_v6 = vld [vmem:[#allocation37_spill] sm:$0xff]  ;;  %v2095_v30 = vshll.u32 %v3987_v17, 16 }
 0x1a5   : > { %3410 = vmatpush3.bf16.msra.mxu0 %v4544_v31  ;;  %v1123_v31 = vpop.f32.mrb[22].mxu0 }
 0x1a6   : > { %3411 = vmatprep.subr.bf16.mxu0 %v4549_v32  ;;  %3430 = vmatpush3.bf16.msra.mxu1 %v4586_v44  ;;  %v1133_v32 = vmax.f32 %v1121_v29, 0.0  ;;  %v3645_v38 = vpop.f32.mrb[23].mxu0  ;;  %v5378_v44 = vld [vmem:[#allocation24_spill] sm:$0xff]  ;;  %v3990_v29 = vld [vmem:[#allocation2 + $0x48] ss:$0 sps:$4 sm:$0x11]  }
 0x1a7   : > { %3431 = vmatprep.subr.bf16.mxu1 %v4594_v46  ;;  %v5380_v46 = vld [vmem:[#allocation25_spill] sm:$0xff] }
 0x1a9   : > { %3412 = vmatpush3.bf16.msra.mxu0 %v4551_v33  ;;  %v1124_v33 = vadd.f32 %v1123_v31, %v4700_v18  ;;  %v5387_v18 = vld [vmem:[#allocation36_spill] sm:$0xff]  ;;  %v2093_v31 = vshrl.u32 %v3987_v17, 16 }
 0x1aa   : > { %3413 = vmatprep.subr.bf16.mxu0 %v4555_v34  ;;  %3432 = vmatpush3.bf16.msra.mxu1 %v4598_v48  ;;  %v5381_v48 = vld [vmem:[#allocation30_spill] sm:$0xff] }
 0x1ab   : > { %3433 = vmatprep.subr.bf16.mxu1 %v4603_v49  ;;  %v1140_v34 = vmax.f32 %v1124_v33, 0.0  ;;  %v5382_v49 = vld [vmem:[#allocation26_spill] sm:$0xff]  ;;  %v2100_v33 = vshll.u32 %v3990_v29, 16 }
 0x1ad   : > { %3414 = vmatpush3.bf16.msra.mxu0 %v4557_v35  ;;  %v5376_v35 = vld [vmem:[#allocation23_spill] sm:$0xff]  ;;  %v4955_v40 = vpack.c.bf16 %v1140_v34, %v1133_v32  ;;  %v2097_v32 = vrot.slane %v2095_v30, 1  ;;  %v2102_v34 = vrot.slane %v2100_v33, 1 }
 0x1ae   : > { %3415 = vmatprep.subr.bf16.mxu0 %v4561_v36  ;;  %3434 = vmatpush3.bf16.msra.mxu1 %v4605_v50  ;;  %v5379_v36 = vld [vmem:[#allocation29_spill] sm:$0xff]  ;;  %v5384_v50 = vld [vmem:[#allocation27_spill] sm:$0xff] }
 0x1af   : > { %3435 = vmatprep.subr.bf16.mxu1 %v4609_v51  ;;  %v5385_v51 = vld [vmem:[#allocation38_spill] sm:$0xff]  ;;  %v2098_v38 = vor.u32 %v2097_v32, %v2093_v31 }
 0x1b1   : > { %3416 = vmatpush3.bf16.msra.mxu0 %v4563_v37  ;;  %v5383_v37 = vld [vmem:[#allocation31_spill] sm:$0xff] }
 0x1b2   : > { %3417 = vmatprep.subr.bf16.mxu0 %v5376_v35  ;;  %3436 = vmatpush3.bf16.msra.mxu1 %v5377_v42  ;;  %v3991_v35 = vld [vmem:[%s5264_s6] sm:$0xff]   ;;  %v2103_v42 = vsel %vm1189_vm9, %v2098_v38, %v2102_v34  ;;  %v4008_v38 = vld [vmem:[%s5264_s6 + $0x70] sm:$0xff]  }
 0x1b3   : > { %3437 = vmatprep.subr.bf16.mxu1 %v5379_v36  ;;  %v3993_v36 = vld [vmem:[%s5264_s6 + $0x10] sm:$0xff]  }
 0x1b5   : > { %3418 = vmatpush3.bf16.msra.mxu0 %v5378_v44  ;;  %v3992_v44 = vld [vmem:[%s5264_s6 + $0x8] sm:$0xff]  }
 0x1b6   : > { %3419 = vmatprep.subr.bf16.mxu0 %v5380_v46  ;;  %3438 = vmatpush3.bf16.msra.mxu1 %v5381_v48  ;;  %v3994_v46 = vld [vmem:[%s5264_s6 + $0x18] sm:$0xff]   ;;  %v3995_v48 = vld [vmem:[%s5264_s6 + $0x20] sm:$0xff]  }
 0x1b7   : > { %3439 = vmatprep.subr.bf16.mxu1 %v5383_v37  ;;  %v3997_v37 = vld [vmem:[%s5264_s6 + $0x30] sm:$0xff]  }
 0x1b9   : > { %3420 = vmatpush3.bf16.msra.mxu0 %v5382_v49  ;;  %v3996_v49 = vld [vmem:[%s5264_s6 + $0x28] sm:$0xff]  }
 0x1ba   : > { %3449 = vmatprep.subr.bf16.mxu0 %v5384_v50  ;;  %3440 = vmatpush3.bf16.msra.mxu1 %v5386_v57  ;;  %v3998_v50 = vld [vmem:[%s5264_s6 + $0x38] sm:$0xff]   ;;  %v4001_v57 = vld [vmem:[%s5264_s6 + $0x40] sm:$0xff]  }
 0x1bb   : > { %3441 = vmatprep.subr.bf16.mxu1 %v5388_v59 }
 0x1bc   : > { %2140 = vmatmul.mubr.bf16.vlgmr.msra.gmra.mrb[32].mxu0 %v5385_v51  ;;  %v4020_v51 = vld [vmem:[#allocation9 + $0xc0] sm:$0xff]  }
 0x1bd   : > { %3450 = vmatpush3.bf16.msra.mxu0 %v5387_v18  ;;  %2221 = vmatprep.mubr.bf16.mxu0 %v4858_v20 }
 0x1be   : > { %3451 = vmatprep.subr.bf16.mxu0 %v5389_v6  ;;  %3442 = vmatpush3.bf16.msra.mxu1 %v5390_v58  ;;  %v4002_v6 = vld [vmem:[%s5264_s6 + $0x48] sm:$0xff]  }
 0x1bf   : > { %3471 = vmatprep.subr.bf16.mxu1 %v5392_v21 }
 0x1c1   : > { %3452 = vmatpush3.bf16.msra.mxu0 %v5391_v1  ;;  %2181 = vmatmul.mubr.bf16.vlgmr.msra.gmra.mrb[32].mxu1 %v3987_v17 }
 0x1c2   : > { %3453 = vmatprep.subr.bf16.mxu0 %v5393_v41  ;;  %3472 = vmatpush3.bf16.msra.mxu1 %v4802_v63  ;;  %v4003_v41 = vld [vmem:[%s5264_s6 + $0x50] sm:$0xff]  }
 0x1c3   : > { %2262 = vmatprep.mubr.bf16.mxu1 %v4787_v3  ;;  %3473 = vmatprep.subr.bf16.mxu1 %v4808_v43  ;;  %v5399_v3 = vld [vmem:[#allocation47_spill] sm:$0xff] }
 0x1c5   : > { %3454 = vmatpush3.bf16.msra.mxu0 %v5394_v52  ;;  %v4004_v52 = vld [vmem:[%s5264_s6 + $0x58] sm:$0xff]  }
 0x1c6   : > { %3455 = vmatprep.subr.bf16.mxu0 %v5395_v25  ;;  %3474 = vmatpush3.bf16.msra.mxu1 %v4822_v22  ;;  %v4006_v25 = vld [vmem:[%s5264_s6 + $0x60] sm:$0xff]  }
 0x1c7   : > { %3475 = vmatprep.subr.bf16.mxu1 %v4827_v53 }
 0x1c9   : > { %3456 = vmatpush3.bf16.msra.mxu0 %v5396_v10  ;;  %v4007_v10 = vld [vmem:[%s5264_s6 + $0x68] sm:$0xff]  }
 0x1ca   : > { %3457 = vmatprep.subr.bf16.mxu0 %v5397_v5  ;;  %3476 = vmatpush3.bf16.msra.mxu1 %v4841_v12  ;;  %v5087_v5 = vld [vmem:[%s5263_s5] ss:$0 sm:$0xff] }
 0x1cb   : > { %3477 = vmatprep.subr.bf16.mxu1 %v4846_v13 }
 0x1cd   : > { %3458 = vmatpush3.bf16.msra.mxu0 %v5398_v27 }
 0x1ce   : > { %3459 = vmatprep.subr.bf16.mxu0 %v4767_v14  ;;  %3478 = vmatpush3.bf16.msra.mxu1 %v4855_v15 }
 0x1cf   : > { %3479 = vmatprep.subr.bf16.mxu1 %v4861_v45 }
 0x1d1   : > { %3460 = vmatpush3.bf16.msra.mxu0 %v4776_v2 }
 0x1d2   : > { %3461 = vmatprep.subr.bf16.mxu0 %v4780_v24  ;;  %3480 = vmatpush3.bf16.msra.mxu1 %v4875_v60 }
 0x1d3   : > { %3481 = vmatprep.subr.bf16.mxu1 %v4879_v39 }
 0x1d5   : > { %3462 = vmatpush3.bf16.msra.mxu0 %v4794_v47 }
 0x1d6   : > { %3463 = vmatprep.subr.bf16.mxu0 %v4811_v9  ;;  %3482 = vmatpush3.bf16.msra.mxu1 %v4885_v0 }
 0x1d7   : > { %3483 = vmatprep.subr.bf16.mxu1 %v4889_v11 }
 0x1d9   : > { %3464 = vmatpush3.bf16.msra.mxu0 %v4818_v61 }
 0x1da   : > { %3666 = vmatprep.subr.bf16.mxu0 %v5369_v16  ;;  %3484 = vmatpush3.bf16.msra.mxu1 %v4898_v4 }
 0x1db   : > { %3485 = vmatprep.subr.bf16.mxu1 %v4902_v19 }
 0x1dc   : > { %2222 = vmatmul.mubr.bf16.vlgmr.msra.gmra.mrb[36].mxu0 %v4830_v7  ;;  %v5400_v7 = vld [vmem:[#allocation52_spill] sm:$0xff] }
 0x1dd   : > { %3667 = vmatpush3.bf16.msra.mxu0 %v4836_v23  ;;  %3682 = vmatprep.mubr.msk.bf16.mxu0 %vm4264_vm1, %v5369_v16 }
 0x1de   : > { %3668 = vmatprep.subr.bf16.mxu0 %v5369_v16  ;;  %3486 = vmatpush3.bf16.msra.mxu1 %v4909_v8 }
 0x1df   : > { %3686 = vmatprep.subr.bf16.mxu1 %v5369_v16 }
 0x1e1   : > { %3669 = vmatpush3.bf16.msra.mxu0 %v4850_v54  ;;  %2263 = vmatmul.mubr.bf16.vlgmr.msra.gmra.mrb[36].mxu1 %v5399_v3 }
 0x1e2   : > { %3670 = vmatprep.subr.bf16.mxu0 %v5369_v16  ;;  %3702 = vmatprep.mubr.msk.bf16.mxu1 %vm4264_vm1, %v5369_v16 }
 0x1e3   : > { %3687 = vmatpush3.bf16.msra.mxu1 %v4001_v57 }
 0x1e4   : > { %3688 = vmatprep.subr.bf16.mxu1 %v5369_v16 }
 0x1e5   : > { %3671 = vmatpush3.bf16.msra.mxu0 %v4869_v62 }
 0x1e6   : > { %3672 = vmatprep.subr.bf16.mxu0 %v5369_v16 }
 0x1e7   : > { %3689 = vmatpush3.bf16.msra.mxu1 %v4002_v6 }
 0x1e8   : > { %3690 = vmatprep.subr.bf16.mxu1 %v5369_v16 }
 0x1e9   : > { %3673 = vmatpush3.bf16.msra.mxu0 %v5400_v7 }
 0x1ea   : > { %3674 = vmatprep.subr.bf16.mxu0 %v5369_v16 }
 0x1eb   : > { %3691 = vmatpush3.bf16.msra.mxu1 %v4003_v41 }
 0x1ec   : > { %3692 = vmatprep.subr.bf16.mxu1 %v5369_v16 }
 0x1ed   : > { %3675 = vmatpush3.bf16.msra.mxu0 %v5401_v28 }
 0x1ee   : > { %3676 = vmatprep.subr.bf16.mxu0 %v5369_v16 }
 0x1ef   : > { %3693 = vmatpush3.bf16.msra.mxu1 %v4004_v52 }
 0x1f0   : > { %3694 = vmatprep.subr.bf16.mxu1 %v5369_v16 }
 0x1f1   : > { %3677 = vmatpush3.bf16.msra.mxu0 %v4906_v55 }
 0x1f2   : > { %3678 = vmatprep.subr.bf16.mxu0 %v5369_v16 }
 0x1f3   : > { %3695 = vmatpush3.bf16.msra.mxu1 %v4006_v25 }
 0x1f4   : > { %3696 = vmatprep.subr.bf16.mxu1 %v5369_v16 }
 0x1f5   : > { %3679 = vmatpush3.bf16.msra.mxu0 %v4914_v26 }
 0x1f6   : > { %3680 = vmatprep.subr.bf16.mxu0 %v5369_v16 }
 0x1f7   : > { %3697 = vmatpush3.bf16.msra.mxu1 %v4007_v10 }
 0x1f8   : > { %3698 = vmatprep.subr.bf16.mxu1 %v5369_v16 }
 0x1f9   : > { %3681 = vmatpush3.bf16.msra.mxu0 %v4924_v56 }
 0x1fa   : > { %3706 = vmatprep.subr.bf16.mxu0 %v5369_v16 }
 0x1fb   : > { %3699 = vmatpush3.bf16.msra.mxu1 %v4008_v38 }
 0x1fc   : > { %3683 = vmatmul.mubr.bf16.vlgmr.msra.gmra.mrb[40].mxu0 %v2103_v42  ;;  %3700 = vmatprep.subr.bf16.mxu1 %v5369_v16 }
 0x1fd   : > { %3707 = vmatpush3.bf16.msra.mxu0 %v3991_v35  ;;  %3722 = vmatprep.mubr.msk.bf16.mxu0 %vm4264_vm1, %v5369_v16 }
 0x1fe   : > { %3708 = vmatprep.subr.bf16.mxu0 %v5369_v16 }
 0x201   : > { %3709 = vmatpush3.bf16.msra.mxu0 %v3992_v44 }
 0x202   : > { %3710 = vmatprep.subr.bf16.mxu0 %v5369_v16 }
 0x205   : > { %3711 = vmatpush3.bf16.msra.mxu0 %v3993_v36 }
 0x206   : > { %3712 = vmatprep.subr.bf16.mxu0 %v5369_v16 }
 0x209   : > { %3713 = vmatpush3.bf16.msra.mxu0 %v3994_v46  ;;  %v4009_v46 = vld [vmem:[%s5264_s6 + $0x78] sm:$0xff]  }
 0x20a   : > { %3714 = vmatprep.subr.bf16.mxu0 %v5369_v16  ;;  %3701 = vmatpush3.bf16.msra.mxu1 %v4009_v46  ;;  %v4025_v46 = vld [vmem:[#allocation9 + $0x90] sm:$0xff]  }
 0x20d   : > { %3715 = vmatpush3.bf16.msra.mxu0 %v3995_v48 }
 0x20e   : > { %3716 = vmatprep.subr.bf16.mxu0 %v5369_v16 }
 0x211   : > { %3717 = vmatpush3.bf16.msra.mxu0 %v3996_v49 }
 0x212   : > { %3718 = vmatprep.subr.bf16.mxu0 %v5369_v16 }
 0x215   : > { %3719 = vmatpush3.bf16.msra.mxu0 %v3997_v37 }
 0x216   : > { %3720 = vmatprep.subr.bf16.mxu0 %v5369_v16 }
 0x219   : > { %3721 = vmatpush3.bf16.msra.mxu0 %v3998_v50 }
 0x21a   : > { %3542 = vmatprep.subr.bf16.mxu0 %v4020_v51  ;;  %v5402_v51 = vld [vmem:[#allocation54_spill] sm:$0xff] }
 0x21b   : > { %3520 = vmatprep.subr.bf16.mxu1 %v5402_v51 }
 0x234   : > { %v3324_v18 = vpop.f32.mrb[20].mxu1 }
 0x235   : > { %v3325_v59 = vpop.f32.mrb[21].mxu1 }
 0x236   : > { %v3326_v58 = vadd.f32 %v3325_v59, %v3324_v18  ;;  %v3327_v1 = vpop.f32.mrb[22].mxu1 }
 0x237   : > { %v3328_v17 = vpop.f32.mrb[23].mxu1 }
 0x238   : > { %v3329_v21 = vadd.f32 %v3328_v17, %v3327_v1  ;;  %v1846_v30 = vadd.f32 %v3326_v58, %v5087_v5 }
 0x23a   : > { %v1849_v34 = vadd.f32 %v3329_v21, %v5087_v5 }
 0x24f   : > { %v3346_v3 = vpop.f32.mrb[24].mxu0 }
 0x250   : > { %v3347_v29 = vpop.f32.mrb[25].mxu0 }
 0x251   : > { %v3348_v31 = vadd.f32 %v3347_v29, %v3346_v3  ;;  %v3349_v32 = vpop.f32.mrb[26].mxu0 }
 0x252   : > { %v3350_v33 = vpop.f32.mrb[27].mxu0 }
 0x253   : > { %v1887_v35 = vadd.f32 %v3348_v31, %v1846_v30  ;;  %v3351_v42 = vadd.f32 %v3350_v33, %v3349_v32 }
 0x254   : > { %v3368_v36 = vpop.f32.mrb[24].mxu1 }
 0x255   : > { %v1890_v44 = vadd.f32 %v3351_v42, %v1849_v34  ;;  %v3369_v48 = vpop.f32.mrb[25].mxu1  ;;  %v4022_v42 = vld [vmem:[#allocation9 + $0xc8] sm:$0xff]  }
 0x256   : > { %v3370_v49 = vadd.f32 %v3369_v48, %v3368_v36  ;;  %v3371_v37 = vpop.f32.mrb[26].mxu1  ;;  %v4024_v36 = vld [vmem:[#allocation9 + $0xd0] sm:$0xff]   ;;  %v4026_v48 = vld [vmem:[#allocation9 + $0xd8] sm:$0xff]  }
 0x257   : > { %v3372_v50 = vpop.f32.mrb[27].mxu1 }
 0x258   : > { %v1928_v57 = vadd.f32 %v3370_v49, %v1887_v35  ;;  %v3373_v18 = vadd.f32 %v3372_v50, %v3371_v37  ;;  %v4021_v35 = vld [vmem:[#allocation9 + $0x80] sm:$0xff]   ;;  %v4027_v49 = vld [vmem:[#allocation9 + $0x98] sm:$0xff]  }
 0x259   : > { %v4028_v37 = vld [vmem:[#allocation9 + $0xe0] sm:$0xff]  }
 0x25a   : > { %v1931_v59 = vadd.f32 %v3373_v18, %v1890_v44  ;;  %v4023_v44 = vld [vmem:[#allocation9 + $0x88] sm:$0xff]  }
 0x26f   : > { %v3390_v6 = vpop.f32.mrb[28].mxu0 }
 0x270   : > { %v3391_v58 = vpop.f32.mrb[29].mxu0 }
 0x271   : > { %v3392_v1 = vadd.f32 %v3391_v58, %v3390_v6  ;;  %v3393_v17 = vpop.f32.mrb[30].mxu0 }
 0x272   : > { %v3394_v21 = vpop.f32.mrb[31].mxu0 }
 0x273   : > { %v3395_v41 = vadd.f32 %v3394_v21, %v3393_v17  ;;  %v1969_v52 = vadd.f32 %v3392_v1, %v1928_v57  ;;  %v4029_v57 = vld [vmem:[#allocation9 + $0xa0] sm:$0xff]   ;;  %v4031_v1 = vld [vmem:[#allocation9 + $0xa8] sm:$0xff]   ;;  %v4032_v17 = vld [vmem:[#allocation9 + $0xf0] sm:$0xff]  }
 0x274   : > { %v2009_v10 = vpop.f32.mrb[28].mxu1 }
 0x275   : > { %v1972_v25 = vadd.f32 %v3395_v41, %v1931_v59  ;;  %v2010_v3 = vadd.f32 %v2009_v10, %v1969_v52  ;;  %v3664_v29 = vpop.f32.mrb[29].mxu1  ;;  %v4030_v59 = vld [vmem:[#allocation9 + $0xe8] sm:$0xff]   ;;  %v4033_v10 = vld [vmem:[#allocation9 + $0xb0] sm:$0xff]  }
 0x276   : > { %v2012_v30 = vpop.f32.mrb[30].mxu1 }
 0x277   : > { %v2013_v31 = vadd.f32 %v2012_v30, %v1972_v25  ;;  %v3665_v32 = vpop.f32.mrb[31].mxu1  ;;  %v2016_v33 = vmax.f32 %v2010_v3, 0.0  ;;  %v4034_v30 = vld [vmem:[#allocation9 + $0xf8] sm:$0xff]  }
 0x279   : > { %v2017_v38 = vmax.f32 %v2013_v31, 0.0 }
 0x27b   : > { %v2018_v34 = vpack.c.bf16 %v2017_v38, %v2016_v33 }
 0x27d   : > { %3723 = vmatmul.mubr.bf16.vlgmr.msra.gmra.mrb[44].mxu0 %v2018_v34  ;;  %v4035_v34 = vld [vmem:[#allocation9 + $0xb8] sm:$0xff]  }
 0x27e   : > { %3543 = vmatpush3.bf16.msra.mxu0 %v4021_v35  ;;  %2655 = vmatprep.mubr.bf16.mxu0 %v4858_v20  ;;  %v5102_v35 = vld [vmem:[#allocation2 + $0x18] ss:$28 sps:$4 sm:$0xff]  }
 0x27f   : > { %3544 = vmatprep.subr.bf16.mxu0 %v4022_v42  ;;  %v4036_v42 = vld [vmem:[#allocation9 + $0x1c0] sm:$0xff]  }
 0x282   : > { %3545 = vmatpush3.bf16.msra.mxu0 %v4023_v44  ;;  %v5403_v44 = vld [vmem:[#allocation50_spill] sm:$0xff] }
 0x283   : > { %3546 = vmatprep.subr.bf16.mxu0 %v4024_v36 }
 0x286   : > { %3547 = vmatpush3.bf16.msra.mxu0 %v4025_v46 }
 0x287   : > { %3548 = vmatprep.subr.bf16.mxu0 %v4026_v48 }
 0x28a   : > { %3549 = vmatpush3.bf16.msra.mxu0 %v4027_v49 }
 0x28b   : > { %3550 = vmatprep.subr.bf16.mxu0 %v4028_v37 }
 0x28e   : > { %3551 = vmatpush3.bf16.msra.mxu0 %v4029_v57 }
 0x28f   : > { %v3421_v50 = vpop.f32.mrb[32].mxu0  ;;  %3552 = vmatprep.subr.bf16.mxu0 %v4030_v59 }
 0x290   : > { %v3422_v51 = vpop.f32.mrb[33].mxu0 }
 0x291   : > { %v3423_v18 = vadd.f32 %v3422_v51, %v3421_v50  ;;  %v3424_v20 = vpop.f32.mrb[34].mxu0 }
 0x292   : > { %v3425_v6 = vpop.f32.mrb[35].mxu0  ;;  %3553 = vmatpush3.bf16.msra.mxu0 %v4031_v1  ;;  %v4038_v1 = vld [vmem:[#allocation9 + $0x48] sm:$0xff]  }
 0x293   : > { %v3426_v58 = vadd.f32 %v3425_v6, %v3424_v20  ;;  %3554 = vmatprep.subr.bf16.mxu0 %v4032_v17  ;;  %v2142_v52 = vadd.f32 %v3423_v18, %v5087_v5  ;;  %v4039_v17 = vld [vmem:[#allocation9 + $0x8] sm:$0xff]  }
 0x294   : > { %v3443_v21 = vpop.f32.mrb[32].mxu1 }
 0x295   : > { %v3444_v41 = vpop.f32.mrb[33].mxu1  ;;  %v2145_v31 = vadd.f32 %v3426_v58, %v5087_v5  ;;  %v4037_v58 = vld [vmem:[#allocation9] sm:$0xff]  }
 0x296   : > { %v3445_v25 = vadd.f32 %v3444_v41, %v3443_v21  ;;  %3555 = vmatpush3.bf16.msra.mxu0 %v4033_v10  ;;  %v3446_v3 = vpop.f32.mrb[34].mxu1  ;;  %v4040_v21 = vld [vmem:[#allocation9 + $0x50] sm:$0xff]   ;;  %v4044_v10 = vld [vmem:[#allocation9 + $0x60] sm:$0xff]  }
 0x297   : > { %v3447_v29 = vpop.f32.mrb[35].mxu1  ;;  %3556 = vmatprep.subr.bf16.mxu0 %v4034_v30  ;;  %v4041_v41 = vld [vmem:[#allocation9 + $0x10] sm:$0xff]   ;;  %v4047_v30 = vld [vmem:[#allocation9 + $0x28] sm:$0xff]  }
 0x298   : > { %v2183_v32 = vadd.f32 %v3445_v25, %v2142_v52  ;;  %v3448_v33 = vadd.f32 %v3447_v29, %v3446_v3  ;;  %v4042_v52 = vld [vmem:[#allocation9 + $0x58] sm:$0xff]   ;;  %v4045_v3 = vld [vmem:[#allocation9 + $0x20] sm:$0xff]   ;;  %v4046_v29 = vld [vmem:[#allocation9 + $0x68] sm:$0xff]  }
 0x299   : > { %v4043_v25 = vld [vmem:[#allocation9 + $0x18] sm:$0xff]  }
 0x29a   : > { %v2186_v38 = vadd.f32 %v3448_v33, %v2145_v31  ;;  %3557 = vmatpush3.bf16.msra.mxu0 %v4035_v34  ;;  %v4048_v31 = vld [vmem:[#allocation9 + $0x70] sm:$0xff]   ;;  %v4050_v33 = vld [vmem:[#allocation9 + $0x78] sm:$0xff]   ;;  %v4052_v34 = vld [vmem:[#allocation9 + $0x140] sm:$0xff]  }
 0x29b   : > { %3586 = vmatprep.subr.bf16.mxu0 %v4036_v42  ;;  %v5406_v42 = vld [vmem:[#allocation48_spill] sm:$0xff] }
 0x29d   : > { %2656 = vmatmul.mubr.bf16.vlgmr.msra.gmra.mrb[48].mxu0 %v5102_v35 }
 0x29e   : > { %3587 = vmatpush3.bf16.msra.mxu0 %v4802_v63  ;;  %2737 = vmatprep.mubr.bf16.mxu0 %v5403_v44  ;;  %v4053_v44 = vld [vmem:[#allocation9 + $0x100] sm:$0xff]  }
 0x29f   : > { %3588 = vmatprep.subr.bf16.mxu0 %v4808_v43 }
 0x2a2   : > { %3589 = vmatpush3.bf16.msra.mxu0 %v4822_v22 }
 0x2a3   : > { %3590 = vmatprep.subr.bf16.mxu0 %v4827_v53 }
 0x2a6   : > { %3591 = vmatpush3.bf16.msra.mxu0 %v4841_v12 }
 0x2a7   : > { %3592 = vmatprep.subr.bf16.mxu0 %v4846_v13 }
 0x2aa   : > { %3593 = vmatpush3.bf16.msra.mxu0 %v4855_v15 }
 0x2ab   : > { %3594 = vmatprep.subr.bf16.mxu0 %v4861_v45 }
 0x2ae   : > { %3595 = vmatpush3.bf16.msra.mxu0 %v4875_v60 }
 0x2af   : > { %v3465_v36 = vpop.f32.mrb[36].mxu0  ;;  %3596 = vmatprep.subr.bf16.mxu0 %v4879_v39 }
 0x2b0   : > { %v3466_v46 = vpop.f32.mrb[37].mxu0 }
 0x2b1   : > { %v3467_v63 = vadd.f32 %v3466_v46, %v3465_v36  ;;  %v3468_v48 = vpop.f32.mrb[38].mxu0  ;;  %v4054_v36 = vld [vmem:[#allocation9 + $0x148] sm:$0xff]  }
 0x2b2   : > { %v3469_v43 = vpop.f32.mrb[39].mxu0  ;;  %3597 = vmatpush3.bf16.msra.mxu0 %v4885_v0  ;;  %v5404_v0 = vld [vmem:[#allocation51_spill] sm:$0xff]  ;;  %v4055_v46 = vld [vmem:[#allocation9 + $0x108] sm:$0xff]  }
 0x2b3   : > { %v2224_v22 = vadd.f32 %v3467_v63, %v2183_v32  ;;  %v3470_v49 = vadd.f32 %v3469_v43, %v3468_v48  ;;  %3598 = vmatprep.subr.bf16.mxu0 %v4889_v11  ;;  %v4049_v32 = vld [vmem:[#allocation9 + $0x30] sm:$0xff]   ;;  %v4058_v43 = vld [vmem:[#allocation9 + $0x158] sm:$0xff]  }
 0x2b4   : > { %v3487_v12 = vpop.f32.mrb[36].mxu1  ;;  %v4056_v63 = vld [vmem:[#allocation9 + $0x150] sm:$0xff]  }
 0x2b5   : > { %v2227_v53 = vadd.f32 %v3470_v49, %v2186_v38  ;;  %v3488_v13 = vpop.f32.mrb[37].mxu1  ;;  %v4051_v38 = vld [vmem:[#allocation9 + $0x38] sm:$0xff]   ;;  %v4057_v48 = vld [vmem:[#allocation9 + $0x110] sm:$0xff]   ;;  %v4060_v49 = vld [vmem:[#allocation9 + $0x160] sm:$0xff]  }
 0x2b6   : > { %v3489_v15 = vadd.f32 %v3488_v13, %v3487_v12  ;;  %3599 = vmatpush3.bf16.msra.mxu0 %v4898_v4  ;;  %v3490_v45 = vpop.f32.mrb[38].mxu1 }
 0x2b7   : > { %v3491_v37 = vpop.f32.mrb[39].mxu1  ;;  %3600 = vmatprep.subr.bf16.mxu0 %v4902_v19 }
 0x2b8   : > { %v3492_v60 = vadd.f32 %v3491_v37, %v3490_v45  ;;  %v2265_v50 = vadd.f32 %v3489_v15, %v2224_v22  ;;  %v4059_v22 = vld [vmem:[#allocation9 + $0x118] sm:$0xff]   ;;  %v4013_v45 = vld [vmem:[%s5264_s6 + $0x90] sm:$0xff]  }
 0x2b9   : > { %v4014_v37 = vld [vmem:[%s5264_s6 + $0x98] sm:$0xff]  }
 0x2ba   : > { %3601 = vmatpush3.bf16.msra.mxu0 %v4909_v8  ;;  %v2268_v39 = vadd.f32 %v3492_v60, %v2227_v53  ;;  %v5405_v8 = vld [vmem:[#allocation46_spill] sm:$0xff]  ;;  %v4012_v53 = vld [vmem:[%s5264_s6 + $0x88] sm:$0xff]  }
 0x2bb   : > { %3746 = vmatprep.subr.bf16.mxu0 %v5369_v16  ;;  %v4015_v60 = vld [vmem:[%s5264_s6 + $0xa0] sm:$0xff]  }
 0x2bd   : > { %2738 = vmatmul.mubr.bf16.vlgmr.msra.gmra.mrb[52].mxu0 %v5404_v0 }
 0x2be   : > { %3762 = vmatprep.mubr.msk.bf16.mxu0 %vm4264_vm1, %v5369_v16 }
 0x2cf   : > { %v2305_v11 = vpop.f32.mrb[40].mxu0 }
 0x2d0   : > { %v2306_v51 = vadd.f32 %v2305_v11, %v2265_v50  ;;  %v3684_v57 = vpop.f32.mrb[41].mxu0  ;;  %v4016_v50 = vld [vmem:[%s5264_s6 + $0xa8] sm:$0xff]   ;;  %v4018_v11 = vld [vmem:[%s5264_s6 + $0xb8] sm:$0xff]  }
 0x2d1   : > { %v2308_v4 = vpop.f32.mrb[42].mxu0 }
 0x2d2   : > { %v2309_v18 = vadd.f32 %v2308_v4, %v2268_v39  ;;  %v3685_v20 = vpop.f32.mrb[43].mxu0  ;;  %v2312_v59 = vmax.f32 %v2306_v51, 0.0  ;;  %v4017_v39 = vld [vmem:[%s5264_s6 + $0xb0] sm:$0xff]  }
 0x2d4   : > { %v2313_v19 = vmax.f32 %v2309_v18, 0.0 }
 0x2d6   : > { %v2314_v6 = vpack.c.bf16 %v2313_v19, %v2312_v59 }
 0x2d8   : > { %3703 = vmatmul.mubr.bf16.vlgmr.msra.gmra.mrb[40].mxu1 %v2314_v6 }
 0x2d9   : > { %3521 = vmatpush3.bf16.msra.mxu1 %v4037_v58  ;;  %2614 = vmatprep.mubr.bf16.mxu1 %v5405_v8 }
 0x2da   : > { %3522 = vmatprep.subr.bf16.mxu1 %v4038_v1 }
 0x2dd   : > { %3523 = vmatpush3.bf16.msra.mxu1 %v4039_v17 }
 0x2de   : > { %3524 = vmatprep.subr.bf16.mxu1 %v4040_v21 }
 0x2e1   : > { %3525 = vmatpush3.bf16.msra.mxu1 %v4041_v41 }
 0x2e2   : > { %3526 = vmatprep.subr.bf16.mxu1 %v4042_v52 }
 0x2e5   : > { %3527 = vmatpush3.bf16.msra.mxu1 %v4043_v25 }
 0x2e6   : > { %3528 = vmatprep.subr.bf16.mxu1 %v4044_v10 }
 0x2e9   : > { %3529 = vmatpush3.bf16.msra.mxu1 %v4045_v3 }
 0x2ea   : > { %3530 = vmatprep.subr.bf16.mxu1 %v4046_v29 }
 0x2ed   : > { %3531 = vmatpush3.bf16.msra.mxu1 %v4047_v30 }
 0x2ee   : > { %3532 = vmatprep.subr.bf16.mxu1 %v4048_v31 }
 0x2f1   : > { %3533 = vmatpush3.bf16.msra.mxu1 %v4049_v32 }
 0x2f2   : > { %3534 = vmatprep.subr.bf16.mxu1 %v4050_v33 }
 0x2f5   : > { %3535 = vmatpush3.bf16.msra.mxu1 %v4051_v38 }
 0x2f6   : > { %3564 = vmatprep.subr.bf16.mxu1 %v4052_v34 }
 0x2f8   : > { %2615 = vmatmul.mubr.bf16.vlgmr.msra.gmra.mrb[44].mxu1 %v5406_v42 }
 0x2f9   : > { %3565 = vmatpush3.bf16.msra.mxu1 %v4053_v44  ;;  %2696 = vmatprep.mubr.bf16.mxu1 %v4955_v40  ;;  %v5407_v40 = vld [vmem:[#allocation49_spill] sm:$0xff] }
 0x2fa   : > { %3566 = vmatprep.subr.bf16.mxu1 %v4054_v36 }
 0x2fd   : > { %3567 = vmatpush3.bf16.msra.mxu1 %v4055_v46 }
 0x2fe   : > { %3568 = vmatprep.subr.bf16.mxu1 %v4056_v63 }
 0x301   : > { %3569 = vmatpush3.bf16.msra.mxu1 %v4057_v48 }
 0x302   : > { %3570 = vmatprep.subr.bf16.mxu1 %v4058_v43 }
 0x305   : > { %3571 = vmatpush3.bf16.msra.mxu1 %v4059_v22 }
 0x306   : > { %3572 = vmatprep.subr.bf16.mxu1 %v4060_v49 }
 0x309   : > { %3573 = vmatpush3.bf16.msra.mxu1 %v5398_v27 }
 0x30a   : > { %3574 = vmatprep.subr.bf16.mxu1 %v4767_v14  ;;  %v2570_v14 = vshll.u32 %v5102_v35, 16 }
 0x30d   : > { %3575 = vmatpush3.bf16.msra.mxu1 %v4776_v2  ;;  %v4010_v2 = vld [vmem:[#allocation2 + $0x50] ss:$0 sps:$4 sm:$0x11]  }
 0x30e   : > { %3576 = vmatprep.subr.bf16.mxu1 %v4780_v24  ;;  %v2572_v24 = vrot.slane %v2570_v14, 1 }
 0x311   : > { %3577 = vmatpush3.bf16.msra.mxu1 %v4794_v47  ;;  %v2575_v47 = vshll.u32 %v4010_v2, 16 }
 0x312   : > { %3578 = vmatprep.subr.bf16.mxu1 %v4811_v9 }
 0x315   : > { %3579 = vmatpush3.bf16.msra.mxu1 %v4818_v61  ;;  %v2577_v61 = vrot.slane %v2575_v47, 1  ;;  %v3280_v47 = vld [vmem:[%s5265_s7] ss:$0 sm:$0xff] }
 0x316   : > { %3726 = vmatprep.subr.bf16.mxu1 %v5369_v16 }
 0x318   : > { %2697 = vmatmul.mubr.bf16.vlgmr.msra.gmra.mrb[48].mxu1 %v5407_v40 }
 0x319   : > { %3727 = vmatpush3.bf16.msra.mxu1 %v4836_v23  ;;  %3742 = vmatprep.mubr.msk.bf16.mxu1 %vm4264_vm1, %v5369_v16 }
 0x31a   : > { %3728 = vmatprep.subr.bf16.mxu1 %v5369_v16 }
 0x31d   : > { %3729 = vmatpush3.bf16.msra.mxu1 %v4850_v54  ;;  %v2568_v54 = vshrl.u32 %v5102_v35, 16 }
 0x31e   : > { %3730 = vmatprep.subr.bf16.mxu1 %v5369_v16 }
 0x31f   : > { %v2573_v9 = vor.u32 %v2572_v24, %v2568_v54 }
 0x321   : > { %3731 = vmatpush3.bf16.msra.mxu1 %v4869_v62  ;;  %v2578_v23 = vsel %vm1189_vm9, %v2573_v9, %v2577_v61 }
 0x322   : > { %3732 = vmatprep.subr.bf16.mxu1 %v5369_v16 }
 0x325   : > { %3733 = vmatpush3.bf16.msra.mxu1 %v5400_v7 }
 0x326   : > { %3734 = vmatprep.subr.bf16.mxu1 %v5369_v16 }
 0x329   : > { %3735 = vmatpush3.bf16.msra.mxu1 %v5401_v28 }
 0x32a   : > { %3736 = vmatprep.subr.bf16.mxu1 %v5369_v16 }
 0x32d   : > { %3737 = vmatpush3.bf16.msra.mxu1 %v4906_v55 }
 0x32e   : > { %3738 = vmatprep.subr.bf16.mxu1 %v5369_v16 }
 0x331   : > { %3739 = vmatpush3.bf16.msra.mxu1 %v4914_v26  ;;  %v4011_v26 = vld [vmem:[%s5264_s6 + $0x80] sm:$0xff]  }
 0x332   : > { %3740 = vmatprep.subr.bf16.mxu1 %v5369_v16  ;;  %3747 = vmatpush3.bf16.msra.mxu0 %v4011_v26 }
 0x333   : > { %3748 = vmatprep.subr.bf16.mxu0 %v5369_v16 }
 0x335   : > { %3741 = vmatpush3.bf16.msra.mxu1 %v4924_v56 }
 0x336   : > { %3749 = vmatpush3.bf16.msra.mxu0 %v4012_v53 }
 0x337   : > { %3750 = vmatprep.subr.bf16.mxu0 %v5369_v16 }
 0x338   : > { %3743 = vmatmul.mubr.bf16.vlgmr.msra.gmra.mrb[52].mxu1 %v2578_v23 }
 0x33a   : > { %3751 = vmatpush3.bf16.msra.mxu0 %v4013_v45 }
 0x33b   : > { %3752 = vmatprep.subr.bf16.mxu0 %v5369_v16 }
 0x33e   : > { %3753 = vmatpush3.bf16.msra.mxu0 %v4014_v37 }
 0x33f   : > { %3754 = vmatprep.subr.bf16.mxu0 %v5369_v16 }
 0x342   : > { %3755 = vmatpush3.bf16.msra.mxu0 %v4015_v60 }
 0x343   : > { %3756 = vmatprep.subr.bf16.mxu0 %v5369_v16 }
 0x346   : > { %3757 = vmatpush3.bf16.msra.mxu0 %v4016_v50 }
 0x347   : > { %3758 = vmatprep.subr.bf16.mxu0 %v5369_v16 }
 0x34a   : > { %3759 = vmatpush3.bf16.msra.mxu0 %v4017_v39 }
 0x34b   : > { %3760 = vmatprep.subr.bf16.mxu0 %v5369_v16 }
 0x34e   : > { %3761 = vmatpush3.bf16.msra.mxu0 %v4018_v11 }
 0x350   : > { %v2503_v62 = vpop.f32.mrb[44].mxu0 }
 0x351   : > { %v3724_v55 = vpop.f32.mrb[45].mxu0 }
 0x352   : > { %v2506_v27 = vpop.f32.mrb[46].mxu0 }
 0x353   : > { %v3725_v7 = vpop.f32.mrb[47].mxu0 }
 0x354   : > { %v2909_v7 = vld [vmem:[%s427_s27] sm:$0xff] }
 0x370   : > { %v3558_v28 = vpop.f32.mrb[48].mxu0 }
 0x371   : > { %v3559_v35 = vpop.f32.mrb[49].mxu0 }
 0x372   : > { %v3560_v56 = vadd.f32 %v3559_v35, %v3558_v28  ;;  %v3561_v12 = vpop.f32.mrb[50].mxu0  ;;  %v2910_v35 = vld [vmem:[%s427_s27 + $0x8] sm:$0xff] }
 0x373   : > { %v3562_v13 = vpop.f32.mrb[51].mxu0 }
 0x374   : > { %v3563_v15 = vadd.f32 %v3562_v13, %v3561_v12 }
 0x390   : > { %v3602_v0 = vpop.f32.mrb[52].mxu0 }
 0x391   : > { %v3603_v51 = vpop.f32.mrb[53].mxu0 }
 0x392   : > { %v3604_v57 = vadd.f32 %v3603_v51, %v3602_v0  ;;  %v3605_v4 = vpop.f32.mrb[54].mxu0 }
 0x393   : > { %v3606_v18 = vpop.f32.mrb[55].mxu0 }
 0x394   : > { %v3607_v20 = vadd.f32 %v3606_v18, %v3605_v4 }
 0x3ab   : > { %v2414_v59 = vpop.f32.mrb[40].mxu1 }
 0x3ac   : > { %v2504_v19 = vadd.f32 %v2503_v62, %v2414_v59  ;;  %v3704_v6 = vpop.f32.mrb[41].mxu1 }
 0x3ad   : > { %v2417_v58 = vpop.f32.mrb[42].mxu1 }
 0x3ae   : > { %v2507_v8 = vadd.f32 %v2506_v27, %v2417_v58  ;;  %v3705_v1 = vpop.f32.mrb[43].mxu1 }
 0x3cb   : > { %v3536_v17 = vpop.f32.mrb[44].mxu1 }
 0x3cc   : > { %v3537_v21 = vpop.f32.mrb[45].mxu1 }
 0x3cd   : > { %v3538_v41 = vadd.f32 %v3537_v21, %v3536_v17  ;;  %v3539_v16 = vpop.f32.mrb[46].mxu1 }
 0x3ce   : > { %v3540_v52 = vpop.f32.mrb[47].mxu1 }
 0x3cf   : > { %v2617_v25 = vadd.f32 %v3538_v41, %v5087_v5  ;;  %v3541_v10 = vadd.f32 %v3540_v52, %v3539_v16 }
 0x3d1   : > { %v2620_v3 = vadd.f32 %v3541_v10, %v5087_v5  ;;  %v2658_v29 = vadd.f32 %v3560_v56, %v2617_v25 }
 0x3d3   : > { %v2661_v30 = vadd.f32 %v3563_v15, %v2620_v3 }
 0x3eb   : > { %v3580_v31 = vpop.f32.mrb[48].mxu1 }
 0x3ec   : > { %v3581_v32 = vpop.f32.mrb[49].mxu1 }
 0x3ed   : > { %v3582_v33 = vadd.f32 %v3581_v32, %v3580_v31  ;;  %v3583_v38 = vpop.f32.mrb[50].mxu1 }
 0x3ee   : > { %v3584_v34 = vpop.f32.mrb[51].mxu1 }
 0x3ef   : > { %v2699_v42 = vadd.f32 %v3582_v33, %v2658_v29  ;;  %v3585_v44 = vadd.f32 %v3584_v34, %v3583_v38 }
 0x3f1   : > { %v2702_v36 = vadd.f32 %v3585_v44, %v2661_v30  ;;  %v2740_v46 = vadd.f32 %v3604_v57, %v2699_v42 }
 0x3f3   : > { %v2743_v63 = vadd.f32 %v3607_v20, %v2702_v36 }
 0x40b   : > { %v2780_v48 = vpop.f32.mrb[52].mxu1 }
 0x40c   : > { %v2781_v43 = vadd.f32 %v2780_v48, %v2740_v46  ;;  %v3744_v22 = vpop.f32.mrb[53].mxu1 }
 0x40d   : > { %v2783_v49 = vpop.f32.mrb[54].mxu1 }
 0x40e   : > { %v2784_v5 = vadd.f32 %v2783_v49, %v2743_v63  ;;  %v3745_v40 = vpop.f32.mrb[55].mxu1  ;;  %v2787_v14 = vmax.f32 %v2781_v43, 0.0 }
 0x410   : > { %v2788_v2 = vmax.f32 %v2784_v5, 0.0 }
 0x412   : > { %v2789_v24 = vpack.c.bf16 %v2788_v2, %v2787_v14 }
 0x414   : > { %3763 = vmatmul.mubr.bf16.vlgmr.msra.gmra.mrb[56].mxu0 %v2789_v24 }
 0x4e7   : > { %v2889_v54 = vpop.f32.mrb[56].mxu0 }
 0x4e8   : > { %v2896_v9 = vadd.f32 %v2889_v54, %v2504_v19  ;;  %v3764_v61 = vpop.f32.mrb[57].mxu0 }
 0x4e9   : > { %v2892_v23 = vpop.f32.mrb[58].mxu0 }
 0x4ea   : > { %v2905_v62 = vadd.f32 %v3280_v47, %v2896_v9  ;;  %v2897_v55 = vadd.f32 %v2892_v23, %v2507_v8  ;;  %v3765_v27 = vpop.f32.mrb[59].mxu0 }
 0x4ec   : > { %v2907_v26 = vmul.f32 11.313708, %v2905_v62  ;;  %v2906_v28 = vadd.f32 %v3280_v47, %v2897_v55 }
 0x4ee   : > { %v2911_v53 = vadd.f32 %v2909_v7, %v2907_v26  ;;  %v2908_v56 = vmul.f32 11.313708, %v2906_v28 }
 0x4f0   : > { %2913 = vst [vmem:[%s412_s13] sm:$0xff] %v2911_v53  ;;  %v2912_v12 = vadd.f32 %v2910_v35, %v2908_v56 }
 0x4f2   : > { %2914 = vst [vmem:[%s412_s13 + $0x8] sm:$0xff] %v2912_v12 }
 0x4f3   : > { %4164 = shalt.err (!%p4161_p9)
}
 0x4f4   : > { %s4165_s15 = scalar_lea.hbm %s5202_s19, 256  ;;  %s4169_s24 = scalar_lea.hbm %s5267_s9, 2048 }
 0x4f5   : > { %p4166_p11 = scmp.ne.s32.totalorder %s5202_s19, %s4165_s15  ;;  %p4170_p8 = scmp.lt.u32.totalorder %s5202_s19, %s5267_s9 }
 0x4f6   : > { %p4171_p2 = scmp.lt.u32.totalorder %s4169_s24, %s4165_s15  ;;  %p4173_p10 = scmp.lt.u32.totalorder %s4165_s15, %s5202_s19 }
 0x4f7   : > { %p4167_p13 = pnand %p4166_p11, %p5408_p12 }
 0x4f8   : > { %p4172_p0 = por %p4171_p2, %p4170_p8 }
 0x4f9   : > { %p4168_p3 = pneg %p4167_p13 }
 0x4fa   : > { %p4174_p1 = por %p4173_p10, %p4172_p0 }
 0x4fc   : > { %p4175_p4 = pnand %p4174_p1, %p4168_p3 }
 0x4fe   : > { %4178 = shalt.err (!%p4175_p4)
}
 0x4ff   : > { %s4266_s16 = smov 128   ;;  %s4267_s27 = smov 8  }
 0x500   : > { %3779 = dma.vmem_to_hbm [thread:$0]  (%p5408_p12), %s5204_s21, 256, %s5202_s19, %s5206_s26, %s4266_s16, %s4266_s16, %s4267_s27  }
 0x501 PF: > { %s5409_s18 = sld [smem:[#allocation18_spill]]  ;;  %s5410_s12 = sld [smem:[#allocation14_spill]] }
 0x502   : > { %s5411_s13 = sld [smem:[#allocation21_spill]] }
 0x507   : > { %p3801_p5 = scmp.ge.s32.totalorder %s5409_s18, 2  ;;  %s2946_s28 = sand.u32 1, %s5410_s12  }
 0x508   : > { %p5412_p6 = scmp.ne.s32.totalorder %s5411_s13, 0  ;;  %s2947_s11 = scalar_lea.sflag [#allocation6], %s2946_s28 }
 0x50a   : > { %p3792_p7 = pnand %p3801_p5, %p5412_p6 }
 0x50c   : > { %4220 = dma.done.wait (!%p3792_p7), %s2947_s11, 256  }
 0x50d   : > { %4222 = vsyncadd (!%p3792_p7), %s2947_s11, 4294967040  ;;  %s24_s16 = sadd.s32 1, %s5409_s18   ;;  %s5413_s14 = sld [smem:[#allocation15_spill]] }
 0x50e   : > { %p21_p9 = scmp.ge.s32.totalorder %s24_s16, 10   ;;  %s5414_s11 = sld [smem:[#allocation22_spill]] }
 0x50f   : > { %s5415_s12 = sld [smem:[#allocation16_spill]]  ;;  %s5416_s13 = sld [smem:[#allocation17_spill]] }
 0x510   : > { %s5417_s23 = sld [smem:[#allocation19_spill]]  ;;  %s5418_s15 = sld [smem:[#allocation20_spill]] }
 0x511   : > { %s5419_s30 = smov %s4229_s10  ;;  %23 = sbr.rel (!%p21_p9) target bundleno = 9 (0x9), region = 114 }
 0x513   : > { %s5420_s10 = smov %s5413_s14 }
 0x516   : > { %s5421_s14 = smov %s5417_s23 }
 0x518   :  { %2952 = vsyncpa [#allocation5], 1 }
 0x519   :  { %2954 = vsyncpa [#allocation5 + $0x1], 1 }
 0x51a   :  { %2955 = vsyncpa [#allocation8], 1 }
 0x51b   :  { %2956 = vsyncpa [#allocation6], 1 }
 0x51c   :  { %2958 = vsyncpa [#allocation6 + $0x1], 1 }

</bundles_post_ra>
